<compile_context>
chip_gen: v6e
topology: v6e:2x2x1
jax: 0.10.0
libtpu: 0.0.40
codegen_flags: <defaults>
</compile_context>

<pallas_src>
import functools

import jax
import jax.numpy as jnp
from jax import lax
from jax.experimental import pallas as pl
from jax.experimental.pallas import tpu as pltpu

_MIB = 1024 * 1024


def _vmem_limit(block_bytes):
    # Explicit scoped-VMEM limit (v5e's default is only 16 MiB).  Clamp so we
    # never request more than comfortably fits on v7x (64 MiB physical).
    return int(min(max(2 * block_bytes, 32 * _MIB), 64 * _MIB))


# ---------------------------------------------------------------------------
# Kernel 1: depthwise conv (groups = C), stride 1, static dilation,
#           with fused BatchNorm partial statistics (f32 sum / sum-of-squares)
# ---------------------------------------------------------------------------
def _depthwise_kernel(x_ref, w_ref, y_ref, psum_ref, psq_ref, pad_ref,
                      *, kernel_size, dilation, pad_beg):
    # x_ref:    (1, H, W, Ct)   unpadded input tile (one batch elem, Ct lanes)
    # w_ref:    (KH, KW, Ct)    depthwise filter tile
    # y_ref:    (1, H, W, Ct)   depthwise output tile
    # psum_ref: (1, 1, Ct)      f32 partial sum over (H, W)
    # psq_ref:  (1, 1, Ct)      f32 partial sum of squares over (H, W)
    # pad_ref:  (Hp, Wp, Ct)    VMEM scratch holding the zero-padded tile
    H = x_ref.shape[1]
    W = x_ref.shape[2]
    Ct = x_ref.shape[3]

    # Build the zero-padded tile in VMEM (replaces the jnp.pad HBM pass).
    pad_ref[...] = jnp.zeros(pad_ref.shape, pad_ref.dtype)
    pad_ref[pl.ds(pad_beg, H), pl.ds(pad_beg, W), :] = x_ref[0]

    # Accumulate the K*K taps in f32; each tap is read directly from the
    # scratch ref (static offsets) — no big sliced temporaries.
    acc = jnp.zeros((H, W, Ct), jnp.float32)
    for kh in range(kernel_size):
        for kw in range(kernel_size):
            tap = pad_ref[pl.ds(kh * dilation, H), pl.ds(kw * dilation, W), :]
            acc = acc + tap.astype(jnp.float32) * w_ref[kh, kw, :].astype(jnp.float32)

    y_ref[0] = acc.astype(y_ref.dtype)

    # Fused BatchNorm partial statistics (full f32 precision, pre-cast acc).
    psum_ref[...] = jnp.sum(acc, axis=(0, 1)).reshape(1, 1, Ct)
    psq_ref[...] = jnp.sum(acc * acc, axis=(0, 1)).reshape(1, 1, Ct)


def depthwise_conv_bnstats(x_nhwc, w_dw, *, kernel_size, dilation):
    """Depthwise conv (stride 1) + per-(n, channel) partial BN statistics."""
    N, H, W, C = x_nhwc.shape
    pad_total = (kernel_size - 1) * dilation        # == k_eff - 1
    pad_beg = pad_total // 2
    Hp = H + pad_total
    Wp = W + pad_total

    # Channel tiling: lane-dense 128 when possible, else the full channel dim.
    # TODO(synk): for small C (< 128 lanes) fold spatial width into the lane
    # dim; for very large H*W add an output-row tile axis with a halo.
    c_tile = 128 if C % 128 == 0 else C
    n_c = C // c_tile

    kernel = functools.partial(_depthwise_kernel, kernel_size=kernel_size,
                               dilation=dilation, pad_beg=pad_beg)

    itm = x_nhwc.dtype.itemsize
    block_bytes = (2 * itm * H * W * c_tile          # double-buffered input
                   + 2 * itm * H * W * c_tile        # double-buffered output
                   + itm * Hp * Wp * c_tile          # padded scratch
                   + 4 * H * W * c_tile)             # f32 accumulator

    y, psum, psq = pl.pallas_call(
        kernel,
        out_shape=(
            jax.ShapeDtypeStruct((N, H, W, C), x_nhwc.dtype),
            jax.ShapeDtypeStruct((N, 1, C), jnp.float32),
            jax.ShapeDtypeStruct((N, 1, C), jnp.float32),
        ),
        grid_spec=pltpu.PrefetchScalarGridSpec(
            num_scalar_prefetch=0,
            grid=(N, n_c),
            in_specs=[
                pl.BlockSpec((1, H, W, c_tile), lambda n, c: (n, 0, 0, c)),
                pl.BlockSpec((kernel_size, kernel_size, c_tile),
                             lambda n, c: (0, 0, c)),
            ],
            out_specs=(
                pl.BlockSpec((1, H, W, c_tile), lambda n, c: (n, 0, 0, c)),
                pl.BlockSpec((1, 1, c_tile), lambda n, c: (n, 0, c)),
                pl.BlockSpec((1, 1, c_tile), lambda n, c: (n, 0, c)),
            ),
            scratch_shapes=[pltpu.VMEM((Hp, Wp, c_tile), x_nhwc.dtype)],
        ),
        compiler_params=pltpu.CompilerParams(
            dimension_semantics=("parallel", "parallel"),
            vmem_limit_bytes=_vmem_limit(block_bytes)),
    )(x_nhwc, w_dw)
    return y, psum, psq


# ---------------------------------------------------------------------------
# Kernel 2: pointwise 1x1 conv as a pure GEMM + bias (BN folded into weights)
# ---------------------------------------------------------------------------
def _pointwise_kernel(y_ref, w_ref, b_ref, o_ref):
    # y_ref: (tm, Cin) native dtype; w_ref: (Cin, tn) native dtype
    # b_ref: (1, tn) f32;            o_ref: (tm, tn)
    o_ref[...] = (
        jnp.dot(y_ref[...], w_ref[...], preferred_element_type=jnp.float32)
        + b_ref[...]
    ).astype(o_ref.dtype)


def pointwise_conv(y2d, w_fused, bias2d):
    M, Cin = y2d.shape
    Cout = w_fused.shape[1]

    # 512 rows per tile (>= ~85% of HBM roofline in measured sweeps); the
    # ragged final tile is handled by the pl.cdiv grid (rows are independent).
    tm = 512 if M >= 512 else M
    tn = 128 if Cout % 128 == 0 else Cout
    grid = (pl.cdiv(M, tm), Cout // tn)

    block_bytes = (2 * y2d.dtype.itemsize * tm * Cin
                   + 2 * w_fused.dtype.itemsize * Cin * tn
                   + 2 * y2d.dtype.itemsize * tm * tn
                   + 4 * tn)

    return pl.pallas_call(
        _pointwise_kernel,
        out_shape=jax.ShapeDtypeStruct((M, Cout), y2d.dtype),
        grid_spec=pltpu.PrefetchScalarGridSpec(
            num_scalar_prefetch=0,
            grid=grid,
            in_specs=[
                pl.BlockSpec((tm, Cin), lambda i, j: (i, 0)),
                pl.BlockSpec((Cin, tn), lambda i, j: (0, j)),
                pl.BlockSpec((1, tn), lambda i, j: (0, j)),
            ],
            out_specs=pl.BlockSpec((tm, tn), lambda i, j: (i, j)),
        ),
        compiler_params=pltpu.CompilerParams(
            dimension_semantics=("parallel", "parallel"),
            vmem_limit_bytes=_vmem_limit(block_bytes)),
    )(y2d, w_fused, bias2d)


# ---------------------------------------------------------------------------
# Full SeparableConv2d forward
# ---------------------------------------------------------------------------
def separable_conv2d(x_nchw, w_dw, w_pw, gamma, beta,
                     *, kernel_size=3, dilation=1, eps=1e-5):
    """x_nchw: (N, C, H, W). w_dw: (KH, KW, C). w_pw: (C, Cout)."""
    # TODO(synk): stride != 1 and the 'gn'/'frn' norm variants are not
    # implemented (module defaults: stride=1, norm_layer='bn').
    N, C, H, W = x_nchw.shape
    Cout = w_pw.shape[1]

    x = jnp.transpose(x_nchw, (0, 2, 3, 1))                  # NCHW -> NHWC

    # Depthwise conv + fused BN partial statistics (padding done in-kernel).
    y, psum, psq = depthwise_conv_bnstats(x, w_dw,
                                          kernel_size=kernel_size,
                                          dilation=dilation)
    Nn, Ho, Wo, _ = y.shape
    M = Nn * Ho * Wo

    # BatchNorm2d (training-mode batch statistics, biased variance) from the
    # in-kernel f32 partial sums; this is O(N*C) glue work.
    ch_sum = jnp.sum(psum[:, 0, :], axis=0)                  # (C,)
    ch_sq = jnp.sum(psq[:, 0, :], axis=0)                    # (C,)
    mean = ch_sum / M
    var = jnp.maximum(ch_sq / M - mean * mean, 0.0)
    scale = gamma.astype(jnp.float32) * lax.rsqrt(var + eps)
    shift = beta.astype(jnp.float32) - mean * scale

    # Fold BN into the pointwise conv: out = y @ (diag(scale) @ W) + shift @ W.
    w_f32 = w_pw.astype(jnp.float32)
    w_fused = (scale[:, None] * w_f32).astype(x.dtype)       # native dtype to MXU
    bias = (shift @ w_f32).reshape(1, Cout).astype(jnp.float32)

    y2d = y.reshape(M, C)
    out2d = pointwise_conv(y2d, w_fused, bias)
    out = out2d.reshape(Nn, Ho, Wo, Cout)
    return jnp.transpose(out, (0, 3, 1, 2))                  # NHWC -> NCHW


# ---------------------------------------------------------------------------
# Pure-JAX reference (for correctness check)
# ---------------------------------------------------------------------------
def reference_forward(x_nchw, w_dw, w_pw, gamma, beta,
                      *, kernel_size=3, dilation=1, eps=1e-5):
    N, C, H, W = x_nchw.shape
    k_eff = kernel_size + (kernel_size - 1) * (dilation - 1)
    pad_total = k_eff - 1
    pad_beg = pad_total // 2
    pad_end = pad_total - pad_beg
    xp = jnp.pad(x_nchw, ((0, 0), (0, 0),
                          (pad_beg, pad_end), (pad_beg, pad_end)))
    w_dw_oihw = jnp.transpose(w_dw, (2, 0, 1))[:, None, :, :]
    y = lax.conv_general_dilated(
        xp, w_dw_oihw, window_strides=(1, 1), padding="VALID",
        rhs_dilation=(dilation, dilation), feature_group_count=C,
        dimension_numbers=("NCHW", "OIHW", "NCHW"))
    mean = jnp.mean(y, axis=(0, 2, 3), keepdims=True)
    var = jnp.mean((y - mean) ** 2, axis=(0, 2, 3), keepdims=True)
    yb = (y - mean) / jnp.sqrt(var + eps)
    yb = yb * gamma.reshape(1, -1, 1, 1) + beta.reshape(1, -1, 1, 1)
    w_pw_oihw = jnp.transpose(w_pw, (1, 0))[:, :, None, None]
    return lax.conv_general_dilated(
        yb, w_pw_oihw, window_strides=(1, 1), padding="VALID",
        dimension_numbers=("NCHW", "OIHW", "NCHW"))


if __name__ == "__main__":
    inplanes, planes, kernel_size, dilation = 8, 16, 3, 1
    N, H, W = 2, 16, 16

    key = jax.random.PRNGKey(0)
    kx, kdw, kpw, kg, kb = jax.random.split(key, 5)

    x = jax.random.normal(kx, (N, inplanes, H, W), dtype=jnp.float32)
    w_dw = jax.random.normal(kdw, (kernel_size, kernel_size, inplanes),
                             dtype=jnp.float32) * 0.1
    w_pw = jax.random.normal(kpw, (inplanes, planes), dtype=jnp.float32) * 0.1
    gamma = 1.0 + 0.1 * jax.random.normal(kg, (inplanes,), dtype=jnp.float32)
    beta = 0.1 * jax.random.normal(kb, (inplanes,), dtype=jnp.float32)

    out = separable_conv2d(x, w_dw, w_pw, gamma, beta,
                           kernel_size=kernel_size, dilation=dilation)
    out = jax.block_until_ready(out)

    ref = jax.block_until_ready(
        reference_forward(x, w_dw, w_pw, gamma, beta,
                          kernel_size=kernel_size, dilation=dilation))

    assert out.shape == (N, planes, H, W), out.shape
    assert jnp.allclose(out, ref, atol=1e-4, rtol=1e-4), \
        float(jnp.max(jnp.abs(out - ref)))
    print("KERNEL_OK")
</pallas_src>

<mosaic_0001>
module attributes {stable_mosaic.version = 11 : i64} {
  func.func @_depthwise_kernel(%arg0: i32, %arg1: i32, %arg2: memref<1x16x16x8xf32, #tpu.memory_space<vmem>>, %arg3: memref<3x3x8xf32, #tpu.memory_space<vmem>>, %arg4: memref<1x16x16x8xf32, #tpu.memory_space<vmem>>, %arg5: memref<1x1x8xf32, #tpu.memory_space<vmem>>, %arg6: memref<1x1x8xf32, #tpu.memory_space<vmem>>, %arg7: memref<18x18x8xf32, #tpu.memory_space<vmem>>) attributes {dimension_semantics = [#tpu.dimension_semantics<parallel>, #tpu.dimension_semantics<parallel>], iteration_bounds = array<i64: 2, 1>, scalar_prefetch = 0 : i64, scratch_operands = 1 : i64, tpu.core_type = #tpu.core_type<tc>, window_params = [{transform_indices = @transform_0, window_bounds = array<i64: 1, 16, 16, 8>}, {transform_indices = @transform_1, window_bounds = array<i64: 3, 3, 8>}, {transform_indices = @transform_2, window_bounds = array<i64: 1, 16, 16, 8>}, {transform_indices = @transform_3, window_bounds = array<i64: 1, 1, 8>}, {transform_indices = @transform_4, window_bounds = array<i64: 1, 1, 8>}]} {
    %cst = arith.constant 0.000000e+00 : f32
    %0 = vector.broadcast %cst : f32 to vector<18x18x8xf32>
    %c0 = arith.constant 0 : index
    %c0_0 = arith.constant 0 : index
    %c0_1 = arith.constant 0 : index
    %1 = vector.load %arg7[%c0, %c0_0, %c0_1] : memref<18x18x8xf32, #tpu.memory_space<vmem>>, vector<18x18x8xf32>
    tpu.vector_store %arg7[%c0, %c0_0, %c0_1], %0 {strides = array<i32>} : memref<18x18x8xf32, #tpu.memory_space<vmem>>, vector<18x18x8xf32>,
    %c0_2 = arith.constant 0 : index
    %c0_3 = arith.constant 0 : index
    %c0_4 = arith.constant 0 : index
    %c0_5 = arith.constant 0 : index
    %2 = vector.load %arg2[%c0_2, %c0_3, %c0_4, %c0_5] : memref<1x16x16x8xf32, #tpu.memory_space<vmem>>, vector<1x16x16x8xf32>
    %3 = vector.shape_cast %2 : vector<1x16x16x8xf32> to vector<16x16x8xf32>
    %c1 = arith.constant 1 : index
    %c1_6 = arith.constant 1 : index
    %c0_7 = arith.constant 0 : index
    %4 = vector.load %arg7[%c1, %c1_6, %c0_7] : memref<18x18x8xf32, #tpu.memory_space<vmem>>, vector<16x16x8xf32>
    tpu.vector_store %arg7[%c1, %c1_6, %c0_7], %3 {strides = array<i32>} : memref<18x18x8xf32, #tpu.memory_space<vmem>>, vector<16x16x8xf32>,
    %cst_8 = arith.constant 0.000000e+00 : f32
    %5 = vector.broadcast %cst_8 : f32 to vector<16x16x8xf32>
    %c0_9 = arith.constant 0 : index
    %c0_10 = arith.constant 0 : index
    %c0_11 = arith.constant 0 : index
    %6 = vector.load %arg7[%c0_9, %c0_10, %c0_11] : memref<18x18x8xf32, #tpu.memory_space<vmem>>, vector<16x16x8xf32>
    %c0_12 = arith.constant 0 : index
    %c0_13 = arith.constant 0 : index
    %c0_14 = arith.constant 0 : index
    %7 = vector.load %arg3[%c0_12, %c0_13, %c0_14] : memref<3x3x8xf32, #tpu.memory_space<vmem>>, vector<1x1x8xf32>
    %8 = vector.shape_cast %7 : vector<1x1x8xf32> to vector<8xf32>
    %9 = vector.shape_cast %8 : vector<8xf32> to vector<1x1x8xf32>
    %10 = vector.broadcast %9 : vector<1x1x8xf32> to vector<16x16x8xf32>
    %11 = arith.mulf %6, %10 : vector<16x16x8xf32>
    %12 = arith.addf %5, %11 : vector<16x16x8xf32>
    %c0_15 = arith.constant 0 : index
    %c1_16 = arith.constant 1 : index
    %c0_17 = arith.constant 0 : index
    %13 = vector.load %arg7[%c0_15, %c1_16, %c0_17] : memref<18x18x8xf32, #tpu.memory_space<vmem>>, vector<16x16x8xf32>
    %c0_18 = arith.constant 0 : index
    %c1_19 = arith.constant 1 : index
    %c0_20 = arith.constant 0 : index
    %14 = vector.load %arg3[%c0_18, %c1_19, %c0_20] : memref<3x3x8xf32, #tpu.memory_space<vmem>>, vector<1x1x8xf32>
    %15 = vector.shape_cast %14 : vector<1x1x8xf32> to vector<8xf32>
    %16 = vector.shape_cast %15 : vector<8xf32> to vector<1x1x8xf32>
    %17 = vector.broadcast %16 : vector<1x1x8xf32> to vector<16x16x8xf32>
    %18 = arith.mulf %13, %17 : vector<16x16x8xf32>
    %19 = arith.addf %12, %18 : vector<16x16x8xf32>
    %c0_21 = arith.constant 0 : index
    %c2 = arith.constant 2 : index
    %c0_22 = arith.constant 0 : index
    %20 = vector.load %arg7[%c0_21, %c2, %c0_22] : memref<18x18x8xf32, #tpu.memory_space<vmem>>, vector<16x16x8xf32>
    %c0_23 = arith.constant 0 : index
    %c2_24 = arith.constant 2 : index
    %c0_25 = arith.constant 0 : index
    %21 = vector.load %arg3[%c0_23, %c2_24, %c0_25] : memref<3x3x8xf32, #tpu.memory_space<vmem>>, vector<1x1x8xf32>
    %22 = vector.shape_cast %21 : vector<1x1x8xf32> to vector<8xf32>
    %23 = vector.shape_cast %22 : vector<8xf32> to vector<1x1x8xf32>
    %24 = vector.broadcast %23 : vector<1x1x8xf32> to vector<16x16x8xf32>
    %25 = arith.mulf %20, %24 : vector<16x16x8xf32>
    %26 = arith.addf %19, %25 : vector<16x16x8xf32>
    %c1_26 = arith.constant 1 : index
    %c0_27 = arith.constant 0 : index
    %c0_28 = arith.constant 0 : index
    %27 = vector.load %arg7[%c1_26, %c0_27, %c0_28] : memref<18x18x8xf32, #tpu.memory_space<vmem>>, vector<16x16x8xf32>
    %c1_29 = arith.constant 1 : index
    %c0_30 = arith.constant 0 : index
    %c0_31 = arith.constant 0 : index
    %28 = vector.load %arg3[%c1_29, %c0_30, %c0_31] : memref<3x3x8xf32, #tpu.memory_space<vmem>>, vector<1x1x8xf32>
    %29 = vector.shape_cast %28 : vector<1x1x8xf32> to vector<8xf32>
    %30 = vector.shape_cast %29 : vector<8xf32> to vector<1x1x8xf32>
    %31 = vector.broadcast %30 : vector<1x1x8xf32> to vector<16x16x8xf32>
    %32 = arith.mulf %27, %31 : vector<16x16x8xf32>
    %33 = arith.addf %26, %32 : vector<16x16x8xf32>
    %c1_32 = arith.constant 1 : index
    %c1_33 = arith.constant 1 : index
    %c0_34 = arith.constant 0 : index
    %34 = vector.load %arg7[%c1_32, %c1_33, %c0_34] : memref<18x18x8xf32, #tpu.memory_space<vmem>>, vector<16x16x8xf32>
    %c1_35 = arith.constant 1 : index
    %c1_36 = arith.constant 1 : index
    %c0_37 = arith.constant 0 : index
    %35 = vector.load %arg3[%c1_35, %c1_36, %c0_37] : memref<3x3x8xf32, #tpu.memory_space<vmem>>, vector<1x1x8xf32>
    %36 = vector.shape_cast %35 : vector<1x1x8xf32> to vector<8xf32>
    %37 = vector.shape_cast %36 : vector<8xf32> to vector<1x1x8xf32>
    %38 = vector.broadcast %37 : vector<1x1x8xf32> to vector<16x16x8xf32>
    %39 = arith.mulf %34, %38 : vector<16x16x8xf32>
    %40 = arith.addf %33, %39 : vector<16x16x8xf32>
    %c1_38 = arith.constant 1 : index
    %c2_39 = arith.constant 2 : index
    %c0_40 = arith.constant 0 : index
    %41 = vector.load %arg7[%c1_38, %c2_39, %c0_40] : memref<18x18x8xf32, #tpu.memory_space<vmem>>, vector<16x16x8xf32>
    %c1_41 = arith.constant 1 : index
    %c2_42 = arith.constant 2 : index
    %c0_43 = arith.constant 0 : index
    %42 = vector.load %arg3[%c1_41, %c2_42, %c0_43] : memref<3x3x8xf32, #tpu.memory_space<vmem>>, vector<1x1x8xf32>
    %43 = vector.shape_cast %42 : vector<1x1x8xf32> to vector<8xf32>
    %44 = vector.shape_cast %43 : vector<8xf32> to vector<1x1x8xf32>
    %45 = vector.broadcast %44 : vector<1x1x8xf32> to vector<16x16x8xf32>
    %46 = arith.mulf %41, %45 : vector<16x16x8xf32>
    %47 = arith.addf %40, %46 : vector<16x16x8xf32>
    %c2_44 = arith.constant 2 : index
    %c0_45 = arith.constant 0 : index
    %c0_46 = arith.constant 0 : index
    %48 = vector.load %arg7[%c2_44, %c0_45, %c0_46] : memref<18x18x8xf32, #tpu.memory_space<vmem>>, vector<16x16x8xf32>
    %c2_47 = arith.constant 2 : index
    %c0_48 = arith.constant 0 : index
    %c0_49 = arith.constant 0 : index
    %49 = vector.load %arg3[%c2_47, %c0_48, %c0_49] : memref<3x3x8xf32, #tpu.memory_space<vmem>>, vector<1x1x8xf32>
    %50 = vector.shape_cast %49 : vector<1x1x8xf32> to vector<8xf32>
    %51 = vector.shape_cast %50 : vector<8xf32> to vector<1x1x8xf32>
    %52 = vector.broadcast %51 : vector<1x1x8xf32> to vector<16x16x8xf32>
    %53 = arith.mulf %48, %52 : vector<16x16x8xf32>
    %54 = arith.addf %47, %53 : vector<16x16x8xf32>
    %c2_50 = arith.constant 2 : index
    %c1_51 = arith.constant 1 : index
    %c0_52 = arith.constant 0 : index
    %55 = vector.load %arg7[%c2_50, %c1_51, %c0_52] : memref<18x18x8xf32, #tpu.memory_space<vmem>>, vector<16x16x8xf32>
    %c2_53 = arith.constant 2 : index
    %c1_54 = arith.constant 1 : index
    %c0_55 = arith.constant 0 : index
    %56 = vector.load %arg3[%c2_53, %c1_54, %c0_55] : memref<3x3x8xf32, #tpu.memory_space<vmem>>, vector<1x1x8xf32>
    %57 = vector.shape_cast %56 : vector<1x1x8xf32> to vector<8xf32>
    %58 = vector.shape_cast %57 : vector<8xf32> to vector<1x1x8xf32>
    %59 = vector.broadcast %58 : vector<1x1x8xf32> to vector<16x16x8xf32>
    %60 = arith.mulf %55, %59 : vector<16x16x8xf32>
    %61 = arith.addf %54, %60 : vector<16x16x8xf32>
    %c2_56 = arith.constant 2 : index
    %c2_57 = arith.constant 2 : index
    %c0_58 = arith.constant 0 : index
    %62 = vector.load %arg7[%c2_56, %c2_57, %c0_58] : memref<18x18x8xf32, #tpu.memory_space<vmem>>, vector<16x16x8xf32>
    %c2_59 = arith.constant 2 : index
    %c2_60 = arith.constant 2 : index
    %c0_61 = arith.constant 0 : index
    %63 = vector.load %arg3[%c2_59, %c2_60, %c0_61] : memref<3x3x8xf32, #tpu.memory_space<vmem>>, vector<1x1x8xf32>
    %64 = vector.shape_cast %63 : vector<1x1x8xf32> to vector<8xf32>
    %65 = vector.shape_cast %64 : vector<8xf32> to vector<1x1x8xf32>
    %66 = vector.broadcast %65 : vector<1x1x8xf32> to vector<16x16x8xf32>
    %67 = arith.mulf %62, %66 : vector<16x16x8xf32>
    %68 = arith.addf %61, %67 : vector<16x16x8xf32>
    %c0_62 = arith.constant 0 : index
    %c0_63 = arith.constant 0 : index
    %c0_64 = arith.constant 0 : index
    %c0_65 = arith.constant 0 : index
    %69 = vector.load %arg4[%c0_62, %c0_63, %c0_64, %c0_65] : memref<1x16x16x8xf32, #tpu.memory_space<vmem>>, vector<1x16x16x8xf32>
    %70 = vector.shape_cast %69 : vector<1x16x16x8xf32> to vector<16x16x8xf32>
    %71 = vector.shape_cast %68 : vector<16x16x8xf32> to vector<1x16x16x8xf32>
    tpu.vector_store %arg4[%c0_62, %c0_63, %c0_64, %c0_65], %71 {strides = array<i32>} : memref<1x16x16x8xf32, #tpu.memory_space<vmem>>, vector<1x16x16x8xf32>,
    %cst_66 = arith.constant dense<0.000000e+00> : vector<8xf32>
    %72 = vector.multi_reduction <add>, %68, %cst_66 [0, 1] : vector<16x16x8xf32> to vector<8xf32>
    %73 = vector.shape_cast %72 : vector<8xf32> to vector<1x1x8xf32>
    %c0_67 = arith.constant 0 : index
    %c0_68 = arith.constant 0 : index
    %c0_69 = arith.constant 0 : index
    %74 = vector.load %arg5[%c0_67, %c0_68, %c0_69] : memref<1x1x8xf32, #tpu.memory_space<vmem>>, vector<1x1x8xf32>
    tpu.vector_store %arg5[%c0_67, %c0_68, %c0_69], %73 {strides = array<i32>} : memref<1x1x8xf32, #tpu.memory_space<vmem>>, vector<1x1x8xf32>,
    %75 = arith.mulf %68, %68 : vector<16x16x8xf32>
    %cst_70 = arith.constant dense<0.000000e+00> : vector<8xf32>
    %76 = vector.multi_reduction <add>, %75, %cst_70 [0, 1] : vector<16x16x8xf32> to vector<8xf32>
    %77 = vector.shape_cast %76 : vector<8xf32> to vector<1x1x8xf32>
    %c0_71 = arith.constant 0 : index
    %c0_72 = arith.constant 0 : index
    %c0_73 = arith.constant 0 : index
    %78 = vector.load %arg6[%c0_71, %c0_72, %c0_73] : memref<1x1x8xf32, #tpu.memory_space<vmem>>, vector<1x1x8xf32>
    tpu.vector_store %arg6[%c0_71, %c0_72, %c0_73], %77 {strides = array<i32>} : memref<1x1x8xf32, #tpu.memory_space<vmem>>, vector<1x1x8xf32>,
    return
  }
  func.func @transform_0(%arg0: i32, %arg1: i32) -> (i32, i32, i32, i32) {
    %c0_i32 = arith.constant 0 : i32
    %c0_i32_0 = arith.constant 0 : i32
    %c0_i32_1 = arith.constant 0 : i32
    return %arg0, %c0_i32, %c0_i32_0, %arg1 : i32, i32, i32, i32
  }
  func.func @transform_1(%arg0: i32, %arg1: i32) -> (i32, i32, i32) {
    %c0_i32 = arith.constant 0 : i32
    %c0_i32_0 = arith.constant 0 : i32
    %c0_i32_1 = arith.constant 0 : i32
    return %c0_i32, %c0_i32_0, %arg1 : i32, i32, i32
  }
  func.func @transform_2(%arg0: i32, %arg1: i32) -> (i32, i32, i32, i32) {
    %c0_i32 = arith.constant 0 : i32
    %c0_i32_0 = arith.constant 0 : i32
    %c0_i32_1 = arith.constant 0 : i32
    return %arg0, %c0_i32, %c0_i32_0, %arg1 : i32, i32, i32, i32
  }
  func.func @transform_3(%arg0: i32, %arg1: i32) -> (i32, i32, i32) {
    %c0_i32 = arith.constant 0 : i32
    %c0_i32_0 = arith.constant 0 : i32
    return %arg0, %c0_i32, %arg1 : i32, i32, i32
  }
  func.func @transform_4(%arg0: i32, %arg1: i32) -> (i32, i32, i32) {
    %c0_i32 = arith.constant 0 : i32
    %c0_i32_0 = arith.constant 0 : i32
    return %arg0, %c0_i32, %arg1 : i32, i32, i32
  }
}

</mosaic_0001>

<bundles_post_ra>
// kernel: tpu_custom_call.1
= control target key start
LH: loop header
LB: loop body
LE: loop exit
PB: predicated region body
PF: predicated region fallthrough
CT: control target
= control target key end

     0   :  { %10 = vsyncpa [#allocation4], 0  ;;  %s3103_s0 = inlined_call_operand.vmem [shape: f32[2,16,16,8], index: 0, kind: input, shape index: {}]   ;;  %s3104_s1 = inlined_call_operand.vmem [shape: f32[3,3,8], index: 1, kind: input, shape index: {}]   ;;  %s3105_s2 = inlined_call_operand.vmem [shape: f32[2,16,16,8], index: 2, kind: output, shape index: {0}]   ;;  %s3106_s3 = inlined_call_operand.hbm [shape: f32[2,1,8], index: 3, kind: output, shape index: {1}]   ;;  %s3107_s4 = inlined_call_operand.hbm [shape: f32[2,1,8], index: 4, kind: output, shape index: {2}]  }
   0x1   :  { %12 = vsyncpa [#allocation4 + $0x1], 0 }
   0x2   :  { %13 = vsyncpa [#allocation6], 0 }
   0x3   :  { %15 = vsyncpa [#allocation6 + $0x1], 0  ;;  %s1937_s15 = smov 0   ;;  %s1939_s16 = smov 0  }
   0x4   :  { %s1941_s17 = smov 0   ;;  %s1943_s18 = smov 0  }
   0x5   :  { %s1945_s19 = smov 0   ;;  %s1947_s20 = smov 0  }
   0x6 LB: > { %s1700_s21 = sadd.s32 4294967295, %s1907_s20   ;;  %s1701_s22 = sadd.s32 4294967294, %s1907_s20   ;;  %s1907_s20 = sphi %s1947_s20, %s21_s20   ;;  %s1903_s19 = sphi %s1945_s19, %s3114_s19   ;;  %s1899_s18 = sphi %s1943_s18, %s3113_s18   ;;  %s1895_s17 = sphi %s1941_s17, %s3112_s17   ;;  %s1891_s16 = sphi %s1939_s16, %s3111_s16   ;;  %s1887_s15 = sphi %s1937_s15, %s3110_s15  }
   0x7   : > { %s33_s23 = sadd.s32 1, %s1903_s19  ;;  %s124_s24 = sadd.s32 1, %s1895_s17 }
   0x8   : > { %p35_p0 = scmp.ge.s32.totalorder %s33_s23, 2  ;;  %p134_p1 = scmp.ne.s32.totalorder %s1895_s17, %s1891_s16 }
   0x9   : > { %p135_p2 = scmp.eq.s32.totalorder %s1700_s21, 1  ;;  %p140_p3 = scmp.ne.s32.totalorder %s1891_s16, %s1887_s15 }
   0xa   : > { %s3116_s23 = smov (%p35_p0, %s33_s23), 0  ;;  %p141_p5 = scmp.eq.s32.totalorder %s1701_s22, 1 }
   0xb   : > { %p1977_p4 = por %p135_p2, %p134_p1  ;;  %s119_s26 = ssub.s32 %s1903_s19, %s3116_s23 }
   0xc   : > { %p1705_p6 = scmp.ge.s32.totalorder %s1907_s20, 1  ;;  %p122_p7 = scmp.eq.s32.totalorder %s119_s26, 0 }
   0xd   : > { %p1984_p8 = por %p141_p5, %p140_p3  ;;  %p205_p9 = scmp.lt.s32.totalorder %s1907_s20, 3 }
   0xe   : > { %s1990_s28 = scalar_select %p122_p7, %s1895_s17, %s124_s24  }
   0xf   : > { %p206_p10 = pnand %p1705_p6, %p205_p9 }
  0x10   : > { %p249_p11 = scmp.lt.s32.totalorder (!%p206_p10), %s1899_s18, 1  ;;  %s3014_s22 = sand.u32 (!%p206_p10), 1, %s1891_s16  }
  0x11   : > { %209 = sbr.rel (%p206_p10) target bundleno = 285 (0x11d), region = 28  ;;  %s1725_s26 = sshll.u32 (!%p206_p10), %s1899_s18, 4 }
  0x12   : > { %s248_s5 = scalar_lea.vmem (!%p206_p10), [#allocation5], %s3014_s22  ;;  %s3026_s10 = scalar_lea.hbm (!%p206_p10), %s3106_s3, %s1725_s26 }
  0x13   : > { %s1550_s6 = sshll.u32 (!%p206_p10), %s248_s5, 4  ;;  %s3034_s12 = scalar_lea.hbm (!%p206_p10), %s3107_s4, %s1725_s26  ;;  %s3028_s6 = int_to_ptr.vmem [resolvable:$true] %s1550_s6 }
  0x14   : > { %s1516_s13 = scalar_lea.sflag (!%p206_p10), [#allocation4], %s3014_s22 }
  0x16   : > { %vm269_vm0 = vcmask 64512   ;;  %vm272_vm1 = vcmask 58368   ;;  %v1909_v0 = vmov 0.0   ;;  %s2050_s29 = scalar_select %p249_p11, %s1899_s18, 1  ;;  %v2072_v7 = vld [vmem:[%s3104_s1] ss:$0 sm:$0xff] }
  0x17   : > { %270 = vst.msk [vmem:[#allocation2] sm:$0xff] %vm269_vm0, %v1909_v0  ;;  %271 = vst.msk [vmem:[#allocation2 + $0x8] sm:$0xff] %vm269_vm0, %v1909_v0  ;;  %v2077_v8 = vld [vmem:[%s3104_s1 + $0x1] ss:$0 sm:$0xff]  ;;  %v2082_v9 = vld [vmem:[%s3104_s1 + $0x2] ss:$0 sm:$0xff] }
  0x18   : > { %274 = vst.msk [vmem:[#allocation2 + $0x18] sm:$0xff] %vm269_vm0, %v1909_v0  ;;  %275 = vst.msk [vmem:[#allocation2 + $0x20] sm:$0xff] %vm269_vm0, %v1909_v0  ;;  %s1729_s30 = sshll.u32 %s2050_s29, 8  ;;  %v2105_v19 = vld [vmem:[%s3104_s1 + $0x4] ss:$0 sm:$0xff]  ;;  %vm1403_vm2 = vcmask 57344  }
  0x19   : > { %277 = vst.msk [vmem:[#allocation2 + $0x30] sm:$0xff] %vm269_vm0, %v1909_v0  ;;  %278 = vst.msk [vmem:[#allocation2 + $0x38] sm:$0xff] %vm269_vm0, %v1909_v0  ;;  %s2058_s7 = scalar_lea.vmem %s3103_s0, %s1729_s30  ;;  %v2113_v23 = vld [vmem:[%s3104_s1 + $0x5] ss:$0 sm:$0xff]  ;;  %v2118_v24 = vld [vmem:[%s3104_s1 + $0x6] ss:$0 sm:$0xff]  ;;  %s2216_s21 = scalar_lea.vmem %s3105_s2, %s1729_s30 }
  0x1a   : > { %280 = vst.msk [vmem:[#allocation2 + $0x48] sm:$0xff] %vm269_vm0, %v1909_v0  ;;  %281 = vst.msk [vmem:[#allocation2 + $0x50] sm:$0xff] %vm269_vm0, %v1909_v0  ;;  %v325_v1 = vld [vmem:[%s2058_s7] sm:$0xff]  ;;  %v326_v2 = vld [vmem:[%s2058_s7 + $0x8] sm:$0xff]  ;;  %s1910_s29 = smov [#allocation3]  }
  0x1b   : > { %283 = vst.msk [vmem:[#allocation2 + $0x60] sm:$0xff] %vm269_vm0, %v1909_v0  ;;  %284 = vst.msk [vmem:[#allocation2 + $0x68] sm:$0xff] %vm269_vm0, %v1909_v0  ;;  %v327_v3 = vld [vmem:[%s2058_s7 + $0x10] sm:$0xff]  ;;  %v328_v4 = vld [vmem:[%s2058_s7 + $0x18] sm:$0xff]  ;;  %s1805_s30 = sshll.u32 %s1910_s29, 4  ;;  %s1806_s30 = int_to_ptr.vmem [resolvable:$false] %s1805_s30 }
  0x1c   : > { %286 = vst.msk [vmem:[#allocation2 + $0x78] sm:$0xff] %vm269_vm0, %v1909_v0  ;;  %287 = vst.msk [vmem:[#allocation2 + $0x80] sm:$0xff] %vm269_vm0, %v1909_v0  ;;  %v329_v5 = vld [vmem:[%s2058_s7 + $0x20] sm:$0xff]  ;;  %v330_v6 = vld [vmem:[%s2058_s7 + $0x28] sm:$0xff] }
  0x1d   : > { %289 = vst.msk [vmem:[#allocation2 + $0x90] sm:$0xff] %vm269_vm0, %v1909_v0  ;;  %290 = vst.msk [vmem:[#allocation2 + $0x98] sm:$0xff] %vm269_vm0, %v1909_v0  ;;  %v331_v10 = vld [vmem:[%s2058_s7 + $0x30] sm:$0xff]  ;;  %v332_v11 = vld [vmem:[%s2058_s7 + $0x38] sm:$0xff] }
  0x1e   : > { %292 = vst.msk [vmem:[#allocation2 + $0xa8] sm:$0xff] %vm269_vm0, %v1909_v0  ;;  %293 = vst.msk [vmem:[#allocation2 + $0xb0] sm:$0xff] %vm269_vm0, %v1909_v0  ;;  %v333_v12 = vld [vmem:[%s2058_s7 + $0x40] sm:$0xff]  ;;  %v334_v13 = vld [vmem:[%s2058_s7 + $0x48] sm:$0xff] }
  0x1f   : > { %295 = vst.msk [vmem:[#allocation2 + $0xc0] sm:$0xff] %vm269_vm0, %v1909_v0  ;;  %296 = vst.msk [vmem:[#allocation2 + $0xc8] sm:$0xff] %vm269_vm0, %v1909_v0  ;;  %v335_v14 = vld [vmem:[%s2058_s7 + $0x50] sm:$0xff]  ;;  %v336_v15 = vld [vmem:[%s2058_s7 + $0x58] sm:$0xff] }
  0x20   : > { %298 = vst.msk [vmem:[#allocation2 + $0xd8] sm:$0xff] %vm269_vm0, %v1909_v0  ;;  %299 = vst.msk [vmem:[#allocation2 + $0xe0] sm:$0xff] %vm269_vm0, %v1909_v0  ;;  %v337_v16 = vld [vmem:[%s2058_s7 + $0x60] sm:$0xff]  ;;  %v338_v17 = vld [vmem:[%s2058_s7 + $0x68] sm:$0xff] }
  0x21   : > { %301 = vst.msk [vmem:[#allocation2 + $0xf0] sm:$0xff] %vm269_vm0, %v1909_v0  ;;  %302 = vst.msk [vmem:[#allocation2 + $0xf8] sm:$0xff] %vm269_vm0, %v1909_v0  ;;  %v339_v18 = vld [vmem:[%s2058_s7 + $0x70] sm:$0xff]  ;;  %v390_v20 = vld [vmem:[#allocation2] sm:$0xff] }
  0x22   : > { %304 = vst.msk [vmem:[#allocation2 + $0x108] sm:$0xff] %vm269_vm0, %v1909_v0  ;;  %305 = vst.msk [vmem:[#allocation2 + $0x110] sm:$0xff] %vm269_vm0, %v1909_v0  ;;  %v491_v21 = vld [vmem:[#allocation2 + $0x1] sm:$0xff]  ;;  %v427_v26 = vmul.f32 %v2072_v7, %v390_v20  ;;  %v2131_v29 = vld [vmem:[%s3104_s1 + $0x9] ss:$0 sm:$0xff] }
  0x23   : > { %307 = vst.msk [vmem:[#allocation2 + $0x120] sm:$0xff] %vm269_vm0, %v1909_v0  ;;  %308 = vst.msk [vmem:[#allocation2 + $0x128] sm:$0xff] %vm269_vm0, %v1909_v0  ;;  %v592_v22 = vld [vmem:[#allocation2 + $0x2] sm:$0xff]  ;;  %v528_v27 = vmul.f32 %v2077_v8, %v491_v21  ;;  %v340_v36 = vld [vmem:[%s2058_s7 + $0x78] sm:$0xff] }
  0x24   : > { %310 = vst.msk [vmem:[#allocation2 + $0x138] sm:$0xff] %vm269_vm0, %v1909_v0  ;;  %311 = vst.msk [vmem:[#allocation2 + $0x140] sm:$0xff] %vm269_vm0, %v1909_v0  ;;  %v2123_v25 = vld [vmem:[%s3104_s1 + $0x8] ss:$0 sm:$0xff]  ;;  %v629_v28 = vmul.f32 %v2082_v9, %v592_v22  ;;  %v341_v37 = vld [vmem:[%s2058_s7 + $0x80] sm:$0xff] }
  0x25   : > { %313 = vst.msk [vmem:[#allocation2 + $0x150] sm:$0xff] %vm269_vm0, %v1909_v0  ;;  %314 = vst.msk [vmem:[#allocation2 + $0x158] sm:$0xff] %vm269_vm0, %v1909_v0  ;;  %v391_v30 = vld [vmem:[#allocation2 + $0x8] sm:$0xff]  ;;  %v560_v39 = vadd.f32 %v528_v27, %v427_v26 }
  0x26   : > { %316 = vst.msk [vmem:[#allocation2 + $0x168] sm:$0xff] %vm269_vm0, %v1909_v0  ;;  %317 = vst.msk [vmem:[#allocation2 + $0x170] sm:$0xff] %vm269_vm0, %v1909_v0  ;;  %v428_v33 = vmul.f32 %v2072_v7, %v391_v30  ;;  %v342_v38 = vld [vmem:[%s2058_s7 + $0x88] sm:$0xff] }
  0x27   : > { %319 = vst.msk [vmem:[#allocation2 + $0x180] sm:$0xff] %vm269_vm0, %v1909_v0  ;;  %320 = vst.msk [vmem:[#allocation2 + $0x188] sm:$0xff] %vm269_vm0, %v1909_v0  ;;  %v2148_v46 = vld [vmem:[%s3104_s1 + $0xa] ss:$0 sm:$0xff]  ;;  %v661_v48 = vadd.f32 %v629_v28, %v560_v39  ;;  %v344_v39 = vld [vmem:[%s2058_s7 + $0x98] sm:$0xff] }
  0x28   : > { %322 = vst.msk [vmem:[#allocation2 + $0x198] sm:$0xff] %vm269_vm0, %v1909_v0  ;;  %323 = vst.msk [vmem:[#allocation2 + $0x1a0] sm:$0xff] %vm269_vm0, %v1909_v0 }
  0x29   : > { %273 = vst.msk [vmem:[#allocation2 + $0x10] sm:$0x3] %vm272_vm1, %v1909_v0  ;;  %276 = vst.msk [vmem:[#allocation2 + $0x28] sm:$0x3] %vm272_vm1, %v1909_v0 }
  0x2a   : > { %279 = vst.msk [vmem:[#allocation2 + $0x40] sm:$0x3] %vm272_vm1, %v1909_v0  ;;  %282 = vst.msk [vmem:[#allocation2 + $0x58] sm:$0x3] %vm272_vm1, %v1909_v0 }
  0x2b   : > { %285 = vst.msk [vmem:[#allocation2 + $0x70] sm:$0x3] %vm272_vm1, %v1909_v0  ;;  %288 = vst.msk [vmem:[#allocation2 + $0x88] sm:$0x3] %vm272_vm1, %v1909_v0 }
  0x2c   : > { %291 = vst.msk [vmem:[#allocation2 + $0xa0] sm:$0x3] %vm272_vm1, %v1909_v0  ;;  %294 = vst.msk [vmem:[#allocation2 + $0xb8] sm:$0x3] %vm272_vm1, %v1909_v0 }
  0x2d   : > { %297 = vst.msk [vmem:[#allocation2 + $0xd0] sm:$0x3] %vm272_vm1, %v1909_v0  ;;  %300 = vst.msk [vmem:[#allocation2 + $0xe8] sm:$0x3] %vm272_vm1, %v1909_v0 }
  0x2e   : > { %303 = vst.msk [vmem:[#allocation2 + $0x100] sm:$0x3] %vm272_vm1, %v1909_v0  ;;  %306 = vst.msk [vmem:[#allocation2 + $0x118] sm:$0x3] %vm272_vm1, %v1909_v0 }
  0x2f   : > { %309 = vst.msk [vmem:[#allocation2 + $0x130] sm:$0x3] %vm272_vm1, %v1909_v0  ;;  %312 = vst.msk [vmem:[#allocation2 + $0x148] sm:$0x3] %vm272_vm1, %v1909_v0 }
  0x30   : > { %315 = vst.msk [vmem:[#allocation2 + $0x160] sm:$0x3] %vm272_vm1, %v1909_v0  ;;  %318 = vst.msk [vmem:[#allocation2 + $0x178] sm:$0x3] %vm272_vm1, %v1909_v0  ;;  %v492_v31 = vld [vmem:[#allocation2 + $0x9] sm:$0xff] }
  0x31   : > { %321 = vst.msk [vmem:[#allocation2 + $0x190] sm:$0x3] %vm272_vm1, %v1909_v0  ;;  %324 = vst.msk [vmem:[#allocation2 + $0x1a8] sm:$0x3] %vm272_vm1, %v1909_v0  ;;  %v593_v32 = vld [vmem:[#allocation2 + $0xa] sm:$0xff]  ;;  %v529_v34 = vmul.f32 %v2077_v8, %v492_v31 }
  0x32   : > { %358 = vst.msk [vmem:[#allocation2 + $0x19] sm:$0xff] %vm269_vm0, %v325_v1  ;;  %359 = vst.msk [vmem:[#allocation2 + $0x21] sm:$0xff] %vm269_vm0, %v326_v2  ;;  %v630_v35 = vmul.f32 %v2082_v9, %v593_v32 }
  0x33   : > { %360 = vst.msk [vmem:[#allocation2 + $0x31] sm:$0xff] %vm269_vm0, %v327_v3  ;;  %361 = vst.msk [vmem:[#allocation2 + $0x39] sm:$0xff] %vm269_vm0, %v328_v4  ;;  %v561_v47 = vadd.f32 %v529_v34, %v428_v33 }
  0x34   : > { %362 = vst.msk [vmem:[#allocation2 + $0x49] sm:$0xff] %vm269_vm0, %v329_v5  ;;  %363 = vst.msk [vmem:[#allocation2 + $0x51] sm:$0xff] %vm269_vm0, %v330_v6 }
  0x35   : > { %364 = vst.msk [vmem:[#allocation2 + $0x61] sm:$0xff] %vm269_vm0, %v331_v10  ;;  %365 = vst.msk [vmem:[#allocation2 + $0x69] sm:$0xff] %vm269_vm0, %v332_v11  ;;  %v662_v57 = vadd.f32 %v630_v35, %v561_v47 }
  0x36   : > { %366 = vst.msk [vmem:[#allocation2 + $0x79] sm:$0xff] %vm269_vm0, %v333_v12  ;;  %367 = vst.msk [vmem:[#allocation2 + $0x81] sm:$0xff] %vm269_vm0, %v334_v13 }
  0x37   : > { %368 = vst.msk [vmem:[#allocation2 + $0x91] sm:$0xff] %vm269_vm0, %v335_v14  ;;  %369 = vst.msk [vmem:[#allocation2 + $0x99] sm:$0xff] %vm269_vm0, %v336_v15 }
  0x38   : > { %370 = vst.msk [vmem:[#allocation2 + $0xa9] sm:$0xff] %vm269_vm0, %v337_v16  ;;  %371 = vst.msk [vmem:[#allocation2 + $0xb1] sm:$0xff] %vm269_vm0, %v338_v17 }
  0x39   : > { %372 = vst.msk [vmem:[#allocation2 + $0xc1] sm:$0xff] %vm269_vm0, %v339_v18  ;;  %v693_v40 = vld [vmem:[#allocation2 + $0x18] sm:$0xff]  ;;  %373 = vst.msk [vmem:[#allocation2 + $0xc9] sm:$0xff] %vm269_vm0, %v340_v36  ;;  %v694_v52 = vld [vmem:[#allocation2 + $0x20] sm:$0xff] }
  0x3a   : > { %v795_v41 = vld [vmem:[#allocation2 + $0x19] sm:$0xff]  ;;  %374 = vst.msk [vmem:[#allocation2 + $0xd9] sm:$0xff] %vm269_vm0, %v341_v37  ;;  %375 = vst.msk [vmem:[#allocation2 + $0xe1] sm:$0xff] %vm269_vm0, %v342_v38  ;;  %v731_v43 = vmul.f32 %v2105_v19, %v693_v40  ;;  %v998_v44 = vld [vmem:[#allocation2 + $0x30] sm:$0xff]  ;;  %v732_v58 = vmul.f32 %v2105_v19, %v694_v52  ;;  %v429_v5 = vmul.f32 %v2072_v7, %v693_v40 }
  0x3b   : > { %v896_v42 = vld [vmem:[#allocation2 + $0x1a] sm:$0xff]  ;;  %v2143_v45 = vld [vmem:[#allocation2 + $0x31] sm:$0xff]  ;;  %v832_v49 = vmul.f32 %v2113_v23, %v795_v41  ;;  %v1036_v51 = vmul.f32 %v2123_v25, %v998_v44  ;;  %v897_v54 = vld [vmem:[#allocation2 + $0x22] sm:$0xff]  ;;  %v530_v6 = vmul.f32 %v2077_v8, %v795_v41  ;;  %v733_v13 = vmul.f32 %v2105_v19, %v998_v44  ;;  %377 = vst.msk [vmem:[#allocation2 + $0xf9] sm:$0xff] %vm269_vm0, %v344_v39 }
  0x3c   : > { %v933_v50 = vmul.f32 %v2118_v24, %v896_v42  ;;  %v796_v53 = vld [vmem:[#allocation2 + $0x21] sm:$0xff]  ;;  %v1137_v55 = vmul.f32 %v2131_v29, %v2143_v45  ;;  %v1201_v56 = vld [vmem:[#allocation2 + $0x32] sm:$0xff]  ;;  %v763_v61 = vadd.f32 %v731_v43, %v661_v48  ;;  %v934_v63 = vmul.f32 %v2118_v24, %v897_v54  ;;  %v2182_v22 = vld [vmem:[#allocation2 + $0x49] sm:$0xff] }
  0x3d   : > { %v833_v59 = vmul.f32 %v2113_v23, %v796_v53  ;;  %v2157_v60 = vld [vmem:[#allocation2 + $0x38] sm:$0xff]  ;;  %v1238_v62 = vmul.f32 %v2148_v46, %v1201_v56  ;;  %v764_v2 = vadd.f32 %v732_v58, %v662_v57  ;;  %v631_v12 = vmul.f32 %v2082_v9, %v896_v42  ;;  %v2178_v18 = vld [vmem:[#allocation2 + $0x48] sm:$0xff]  ;;  %v343_v38 = vld [vmem:[%s2058_s7 + $0x90] sm:$0xff] }
  0x3e   : > { %v1037_v0 = vmul.f32 %v2123_v25, %v2157_v60  ;;  %v2163_v1 = vld [vmem:[#allocation2 + $0x39] sm:$0xff]  ;;  %v864_v10 = vadd.f32 %v832_v49, %v763_v61  ;;  %v562_v15 = vadd.f32 %v530_v6, %v429_v5  ;;  %v834_v16 = vmul.f32 %v2113_v23, %v2143_v45  ;;  %v2188_v32 = vld [vmem:[#allocation2 + $0x4a] sm:$0xff]  ;;  %376 = vst.msk [vmem:[#allocation2 + $0xf1] sm:$0xff] %vm269_vm0, %v343_v38 }
  0x3f   : > { %v1138_v3 = vmul.f32 %v2131_v29, %v2163_v1  ;;  %v2167_v4 = vld [vmem:[#allocation2 + $0x3a] sm:$0xff]  ;;  %v865_v14 = vadd.f32 %v833_v59, %v764_v2  ;;  %v935_v17 = vmul.f32 %v2118_v24, %v1201_v56  ;;  %v1038_v21 = vmul.f32 %v2123_v25, %v2178_v18  ;;  %v2203_v47 = vld [vmem:[#allocation2 + $0x50] sm:$0xff]  ;;  %v346_v59 = vld [vmem:[%s2058_s7 + $0xa8] sm:$0xff] }
  0x40   : > { %v1239_v11 = vmul.f32 %v2148_v46, %v2167_v4  ;;  %v965_v20 = vadd.f32 %v933_v50, %v864_v10  ;;  %v430_v26 = vmul.f32 %v2072_v7, %v694_v52  ;;  %v531_v27 = vmul.f32 %v2077_v8, %v796_v53  ;;  %v345_v52 = vld [vmem:[%s2058_s7 + $0xa0] sm:$0xff]  ;;  %v2218_v57 = vld [vmem:[#allocation2 + $0x51] sm:$0xff]  ;;  %379 = vst.msk [vmem:[#allocation2 + $0x111] sm:$0xff] %vm269_vm0, %v346_v59 }
  0x41   : > { %v966_v28 = vadd.f32 %v934_v63, %v865_v14  ;;  %v663_v30 = vadd.f32 %v631_v12, %v562_v15  ;;  %v1139_v31 = vmul.f32 %v2131_v29, %v2182_v22  ;;  %v632_v33 = vmul.f32 %v2082_v9, %v897_v54  ;;  %378 = vst.msk [vmem:[#allocation2 + $0x109] sm:$0xff] %vm269_vm0, %v345_v52  ;;  %v348_v10 = vld [vmem:[%s2058_s7 + $0xb8] sm:$0xff]  ;;  %v2268_v52 = vld [vmem:[#allocation2 + $0x62] sm:$0xff] }
  0x42   : > { %v1068_v34 = vadd.f32 %v1036_v51, %v965_v20  ;;  %v2193_v35 = vmul.f32 %v2148_v46, %v2188_v32  ;;  %v563_v36 = vadd.f32 %v531_v27, %v430_v26  ;;  %v734_v37 = vmul.f32 %v2105_v19, %v2157_v60  ;;  %381 = vst.msk [vmem:[#allocation2 + $0x129] sm:$0xff] %vm269_vm0, %v348_v10 }
  0x43   : > { %v1069_v40 = vadd.f32 %v1037_v0, %v966_v28  ;;  %v765_v41 = vadd.f32 %v733_v13, %v663_v30  ;;  %v835_v42 = vmul.f32 %v2113_v23, %v2163_v1  ;;  %v936_v43 = vmul.f32 %v2118_v24, %v2167_v4  ;;  %v2249_v30 = vld [vmem:[#allocation2 + $0x60] sm:$0xff] }
  0x44   : > { %v1169_v48 = vadd.f32 %v1137_v55, %v1068_v34  ;;  %v664_v49 = vadd.f32 %v632_v33, %v563_v36  ;;  %v1039_v50 = vmul.f32 %v2123_v25, %v2203_v47  ;;  %v431_v51 = vmul.f32 %v2072_v7, %v998_v44  ;;  %v2220_v55 = vld [vmem:[#allocation2 + $0x52] sm:$0xff]  ;;  %v349_v33 = vld [vmem:[%s2058_s7 + $0xc0] sm:$0xff]  ;;  %v350_v34 = vld [vmem:[%s2058_s7 + $0xc8] sm:$0xff] }
  0x45   : > { %v1170_v53 = vadd.f32 %v1138_v3, %v1069_v40  ;;  %v866_v54 = vadd.f32 %v834_v16, %v765_v41  ;;  %v532_v58 = vmul.f32 %v2077_v8, %v2143_v45  ;;  %v633_v44 = vmul.f32 %v2082_v9, %v1201_v56  ;;  %v347_v56 = vld [vmem:[%s2058_s7 + $0xb0] sm:$0xff]  ;;  %382 = vst.msk [vmem:[#allocation2 + $0x139] sm:$0xff] %vm269_vm0, %v349_v33  ;;  %v2258_v41 = vld [vmem:[#allocation2 + $0x61] sm:$0xff] }
  0x46   : > { %v1270_v61 = vadd.f32 %v1238_v62, %v1169_v48  ;;  %v766_v63 = vadd.f32 %v734_v37, %v664_v49  ;;  %v1140_v0 = vmul.f32 %v2131_v29, %v2218_v57  ;;  %v1241_v2 = vmul.f32 %v2148_v46, %v2220_v55  ;;  %380 = vst.msk [vmem:[#allocation2 + $0x121] sm:$0xff] %vm269_vm0, %v347_v56 }
  0x47   : > { %v1271_v3 = vadd.f32 %v1239_v11, %v1170_v53  ;;  %v967_v5 = vadd.f32 %v935_v17, %v866_v54  ;;  %v564_v6 = vadd.f32 %v532_v58, %v431_v51  ;;  %v735_v45 = vmul.f32 %v2105_v19, %v2178_v18  ;;  %383 = vst.msk [vmem:[#allocation2 + $0x141] sm:$0xff] %vm269_vm0, %v350_v34 }
  0x48   : > { %1302 = vst.msk [vmem:[%s2216_s21] sm:$0xff] %vm269_vm0, %v1270_v61  ;;  %v1334_v62 = vsel %vm269_vm0, %v1270_v61, 0.0  ;;  %v1405_v12 = vmul.f32 %v1270_v61, %v1270_v61  ;;  %v867_v13 = vadd.f32 %v835_v42, %v766_v63  ;;  %v836_v14 = vmul.f32 %v2113_v23, %v2182_v22  ;;  %v353_v61 = vld [vmem:[%s2058_s7 + $0xe0] sm:$0xff]  ;;  %v354_v63 = vld [vmem:[%s2058_s7 + $0xe8] sm:$0xff] }
  0x49   : > { %1303 = vst.msk [vmem:[%s2216_s21 + $0x8] sm:$0xff] %vm269_vm0, %v1271_v3  ;;  %v1335_v11 = vsel %vm269_vm0, %v1271_v3, 0.0  ;;  %v1406_v15 = vmul.f32 %v1271_v3, %v1271_v3  ;;  %v1070_v16 = vadd.f32 %v1038_v21, %v967_v5  ;;  %v665_v17 = vadd.f32 %v633_v44, %v564_v6  ;;  %386 = vst.msk [vmem:[#allocation2 + $0x169] sm:$0xff] %vm269_vm0, %v353_v61 }
  0x4a   : > { %v1437_v20 = vsel %vm269_vm0, %v1405_v12, 0.0  ;;  %v1336_v26 = vadd.f32 %v1335_v11, %v1334_v62  ;;  %v968_v27 = vadd.f32 %v936_v43, %v867_v13  ;;  %v937_v28 = vmul.f32 %v2118_v24, %v2188_v32  ;;  %v351_v43 = vld [vmem:[%s2058_s7 + $0xd0] sm:$0xff]  ;;  %387 = vst.msk [vmem:[#allocation2 + $0x171] sm:$0xff] %vm269_vm0, %v354_v63 }
  0x4b   : > { %v1438_v36 = vsel %vm269_vm0, %v1406_v15, 0.0  ;;  %v1171_v37 = vadd.f32 %v1139_v31, %v1070_v16  ;;  %v767_v38 = vadd.f32 %v735_v45, %v665_v17  ;;  %v1040_v21 = vmul.f32 %v2123_v25, %v2249_v30  ;;  %384 = vst.msk [vmem:[#allocation2 + $0x151] sm:$0xff] %vm269_vm0, %v351_v43  ;;  %v2288_v45 = vld [vmem:[#allocation2 + $0x68] sm:$0xff]  ;;  %v355_v15 = vld [vmem:[%s2058_s7 + $0xf0] sm:$0xff] }
  0x4c   : > { %v1439_v39 = vadd.f32 %v1438_v36, %v1437_v20  ;;  %v1071_v40 = vadd.f32 %v1039_v50, %v968_v27  ;;  %v432_v42 = vmul.f32 %v2072_v7, %v2157_v60  ;;  %v533_v31 = vmul.f32 %v2077_v8, %v2163_v1  ;;  %v352_v60 = vld [vmem:[%s2058_s7 + $0xd8] sm:$0xff]  ;;  %v2301_v20 = vld [vmem:[#allocation2 + $0x69] sm:$0xff]  ;;  %388 = vst.msk [vmem:[#allocation2 + $0x181] sm:$0xff] %vm269_vm0, %v355_v15 }
  0x4d   : > { %v1272_v48 = vadd.f32 %v2193_v35, %v1171_v37  ;;  %v868_v49 = vadd.f32 %v836_v14, %v767_v38  ;;  %v1141_v51 = vmul.f32 %v2131_v29, %v2258_v41  ;;  %v634_v50 = vmul.f32 %v2082_v9, %v2167_v4  ;;  %385 = vst.msk [vmem:[#allocation2 + $0x159] sm:$0xff] %vm269_vm0, %v352_v60 }
  0x4e   : > { %v1172_v53 = vadd.f32 %v1140_v0, %v1071_v40  ;;  %v1242_v1 = vmul.f32 %v2148_v46, %v2268_v52  ;;  %v565_v54 = vadd.f32 %v533_v31, %v432_v42  ;;  %v736_v35 = vmul.f32 %v2105_v19, %v2203_v47 }
  0x4f   : > { %1304 = vst.msk [vmem:[%s2216_s21 + $0x10] sm:$0xff] %vm269_vm0, %v1272_v48  ;;  %v1337_v58 = vsel %vm269_vm0, %v1272_v48, 0.0  ;;  %v1407_v44 = vmul.f32 %v1272_v48, %v1272_v48  ;;  %v969_v59 = vadd.f32 %v937_v28, %v868_v49  ;;  %v837_v4 = vmul.f32 %v2113_v23, %v2218_v57  ;;  %v356_v28 = vld [vmem:[%s2058_s7 + $0xf8] sm:$0xff]  ;;  %s1807_s7 = scalar_lea.vmem %s1806_s30, 32 }
  0x50   : > { %v1338_v0 = vadd.f32 %v1337_v58, %v1336_v26  ;;  %v1273_v3 = vadd.f32 %v1241_v2, %v1172_v53  ;;  %v666_v5 = vadd.f32 %v634_v50, %v565_v54  ;;  %v938_v6 = vmul.f32 %v2118_v24, %v2220_v55  ;;  %v2303_v26 = vld [vmem:[#allocation2 + $0x6a] sm:$0xff]  ;;  %389 = vst.msk [vmem:[#allocation2 + $0x189] sm:$0xff] %vm269_vm0, %v356_v28  ;;  %v2334_v54 = vld [vmem:[#allocation2 + $0x7a] sm:$0xff] }
  0x51   : > { %v1440_v56 = vsel %vm269_vm0, %v1407_v44, 0.0  ;;  %v1072_v10 = vadd.f32 %v1040_v21, %v969_v59  ;;  %v1041_v62 = vmul.f32 %v2123_v25, %v2288_v45  ;;  %v433_v2 = vmul.f32 %v2072_v7, %v2178_v18 }
  0x52   : > { %v1441_v12 = vadd.f32 %v1440_v56, %v1439_v39  ;;  %1305 = vst.msk [vmem:[%s2216_s21 + $0x18] sm:$0xff] %vm269_vm0, %v1273_v3  ;;  %v1339_v13 = vsel %vm269_vm0, %v1273_v3, 0.0  ;;  %v1408_v14 = vmul.f32 %v1273_v3, %v1273_v3  ;;  %v768_v11 = vadd.f32 %v736_v35, %v666_v5  ;;  %v2319_v39 = vld [vmem:[#allocation2 + $0x78] sm:$0xff] }
  0x53   : > { %v1340_v16 = vadd.f32 %v1339_v13, %v1338_v0  ;;  %v1173_v17 = vadd.f32 %v1141_v51, %v1072_v10  ;;  %v534_v27 = vmul.f32 %v2077_v8, %v2182_v22  ;;  %v635_v18 = vmul.f32 %v2082_v9, %v2188_v32 }
  0x54   : > { %v1442_v33 = vsel %vm269_vm0, %v1408_v14, 0.0  ;;  %v869_v34 = vadd.f32 %v837_v4, %v768_v11  ;;  %v1142_v36 = vmul.f32 %v2131_v29, %v2301_v20  ;;  %v1243_v37 = vmul.f32 %v2148_v46, %v2303_v26 }
  0x55   : > { %v1443_v38 = vadd.f32 %v1442_v33, %v1441_v12  ;;  %v1274_v22 = vadd.f32 %v1242_v1, %v1173_v17  ;;  %v566_v21 = vadd.f32 %v534_v27, %v433_v2  ;;  %v737_v32 = vmul.f32 %v2105_v19, %v2249_v30  ;;  %v2332_v1 = vld [vmem:[#allocation2 + $0x79] sm:$0xff]  ;;  %v2355_v2 = vld [vmem:[#allocation2 + $0x81] sm:$0xff] }
  0x56   : > { %v970_v40 = vadd.f32 %v938_v6, %v869_v34  ;;  %v838_v42 = vmul.f32 %v2113_v23, %v2258_v41  ;;  %v939_v31 = vmul.f32 %v2118_v24, %v2268_v52  ;;  %v1042_v43 = vmul.f32 %v2123_v25, %v2319_v39 }
  0x57   : > { %1306 = vst.msk [vmem:[%s2216_s21 + $0x20] sm:$0xff] %vm269_vm0, %v1274_v22  ;;  %v1341_v48 = vsel %vm269_vm0, %v1274_v22, 0.0  ;;  %v1409_v49 = vmul.f32 %v1274_v22, %v1274_v22  ;;  %v667_v51 = vadd.f32 %v635_v18, %v566_v21  ;;  %v434_v50 = vmul.f32 %v2072_v7, %v2203_v47  ;;  %v2379_v21 = vld [vmem:[#allocation2 + $0x90] sm:$0xff] }
  0x58   : > { %v1342_v60 = vadd.f32 %v1341_v48, %v1340_v16  ;;  %v1073_v53 = vadd.f32 %v1041_v62, %v970_v40  ;;  %v535_v35 = vmul.f32 %v2077_v8, %v2218_v57  ;;  %v636_v58 = vmul.f32 %v2082_v9, %v2220_v55  ;;  %v2347_v57 = vld [vmem:[#allocation2 + $0x80] sm:$0xff] }
  0x59   : > { %v1444_v44 = vsel %vm269_vm0, %v1409_v49, 0.0  ;;  %v769_v59 = vadd.f32 %v737_v32, %v667_v51  ;;  %v1143_v4 = vmul.f32 %v2131_v29, %v2332_v1  ;;  %v1244_v47 = vmul.f32 %v2148_v46, %v2334_v54  ;;  %v2385_v49 = vld [vmem:[#allocation2 + $0x91] sm:$0xff] }
  0x5a   : > { %v1445_v61 = vadd.f32 %v1444_v44, %v1443_v38  ;;  %v1174_v63 = vadd.f32 %v1142_v36, %v1073_v53  ;;  %v567_v0 = vadd.f32 %v535_v35, %v434_v50  ;;  %v738_v3 = vmul.f32 %v2105_v19, %v2288_v45  ;;  %v2387_v51 = vld [vmem:[#allocation2 + $0x92] sm:$0xff] }
  0x5b   : > { %v870_v5 = vadd.f32 %v838_v42, %v769_v59  ;;  %v839_v55 = vmul.f32 %v2113_v23, %v2301_v20  ;;  %v940_v6 = vmul.f32 %v2118_v24, %v2303_v26  ;;  %v1043_v56 = vmul.f32 %v2123_v25, %v2347_v57 }
  0x5c   : > { %v1275_v10 = vadd.f32 %v1243_v37, %v1174_v63  ;;  %v668_v62 = vadd.f32 %v636_v58, %v567_v0  ;;  %v435_v12 = vmul.f32 %v2072_v7, %v2249_v30  ;;  %v536_v13 = vmul.f32 %v2077_v8, %v2258_v41  ;;  %v2370_v30 = vld [vmem:[#allocation2 + $0x82] sm:$0xff] }
  0x5d   : > { %v971_v14 = vadd.f32 %v939_v31, %v870_v5  ;;  %v1144_v11 = vmul.f32 %v2131_v29, %v2355_v2  ;;  %v637_v15 = vmul.f32 %v2082_v9, %v2268_v52  ;;  %v739_v16 = vmul.f32 %v2105_v19, %v2319_v39 }
  0x5e   : > { %1307 = vst.msk [vmem:[%s2216_s21 + $0x28] sm:$0xff] %vm269_vm0, %v1275_v10  ;;  %v1343_v17 = vsel %vm269_vm0, %v1275_v10, 0.0  ;;  %v1410_v27 = vmul.f32 %v1275_v10, %v1275_v10  ;;  %v770_v18 = vadd.f32 %v738_v3, %v668_v62  ;;  %v568_v28 = vadd.f32 %v536_v13, %v435_v12 }
  0x5f   : > { %v1344_v41 = vadd.f32 %v1343_v17, %v1342_v60  ;;  %v1074_v33 = vadd.f32 %v1042_v43, %v971_v14  ;;  %v1245_v34 = vmul.f32 %v2148_v46, %v2370_v30  ;;  %v840_v52 = vmul.f32 %v2113_v23, %v2332_v1  ;;  %v2417_v17 = vld [vmem:[#allocation2 + $0x99] sm:$0xff] }
  0x60   : > { %v1446_v36 = vsel %vm269_vm0, %v1410_v27, 0.0  ;;  %v871_v37 = vadd.f32 %v839_v55, %v770_v18  ;;  %v669_v38 = vadd.f32 %v637_v15, %v568_v28  ;;  %v941_v22 = vmul.f32 %v2118_v24, %v2334_v54 }
  0x61   : > { %v1447_v32 = vadd.f32 %v1446_v36, %v1445_v61  ;;  %v1175_v40 = vadd.f32 %v1143_v4, %v1074_v33  ;;  %v1044_v42 = vmul.f32 %v2123_v25, %v2379_v21  ;;  %v436_v31 = vmul.f32 %v2072_v7, %v2288_v45 }
  0x62   : > { %v972_v43 = vadd.f32 %v940_v6, %v871_v37  ;;  %v771_v48 = vadd.f32 %v739_v16, %v669_v38  ;;  %v537_v50 = vmul.f32 %v2077_v8, %v2301_v20  ;;  %v638_v60 = vmul.f32 %v2082_v9, %v2303_v26  ;;  %v2401_v20 = vld [vmem:[#allocation2 + $0x98] sm:$0xff]  ;;  %v2434_v38 = vld [vmem:[#allocation2 + $0xa8] sm:$0xff] }
  0x63   : > { %v1276_v53 = vadd.f32 %v1244_v47, %v1175_v40  ;;  %v1145_v35 = vmul.f32 %v2131_v29, %v2385_v49  ;;  %v1246_v45 = vmul.f32 %v2148_v46, %v2387_v51  ;;  %v740_v58 = vmul.f32 %v2105_v19, %v2347_v57 }
  0x64   : > { %v1075_v44 = vadd.f32 %v1043_v56, %v972_v43  ;;  %v872_v59 = vadd.f32 %v840_v52, %v771_v48  ;;  %v569_v4 = vadd.f32 %v537_v50, %v436_v31  ;;  %v841_v61 = vmul.f32 %v2113_v23, %v2355_v2 }
  0x65   : > { %1308 = vst.msk [vmem:[%s2216_s21 + $0x30] sm:$0xff] %vm269_vm0, %v1276_v53  ;;  %v1345_v26 = vsel %vm269_vm0, %v1276_v53, 0.0  ;;  %v1411_v47 = vmul.f32 %v1276_v53, %v1276_v53  ;;  %v942_v63 = vmul.f32 %v2118_v24, %v2370_v30  ;;  %v1045_v0 = vmul.f32 %v2123_v25, %v2401_v20 }
  0x66   : > { %v1346_v3 = vadd.f32 %v1345_v26, %v1344_v41  ;;  %v1176_v5 = vadd.f32 %v1144_v11, %v1075_v44  ;;  %v973_v55 = vadd.f32 %v941_v22, %v872_v59  ;;  %v670_v6 = vadd.f32 %v638_v60, %v569_v4  ;;  %v2419_v11 = vld [vmem:[#allocation2 + $0x9a] sm:$0xff]  ;;  %v2448_v59 = vld [vmem:[#allocation2 + $0xa9] sm:$0xff] }
  0x67   : > { %v1448_v56 = vsel %vm269_vm0, %v1411_v47, 0.0  ;;  %v437_v10 = vmul.f32 %v2072_v7, %v2319_v39  ;;  %v538_v62 = vmul.f32 %v2077_v8, %v2332_v1  ;;  %v639_v12 = vmul.f32 %v2082_v9, %v2334_v54 }
  0x68   : > { %v1449_v13 = vadd.f32 %v1448_v56, %v1447_v32  ;;  %v1277_v14 = vadd.f32 %v1245_v34, %v1176_v5  ;;  %v1076_v15 = vadd.f32 %v1044_v42, %v973_v55  ;;  %v772_v16 = vadd.f32 %v740_v58, %v670_v6 }
  0x69   : > { %v1146_v27 = vmul.f32 %v2131_v29, %v2417_v17  ;;  %v1247_v39 = vmul.f32 %v2148_v46, %v2419_v11  ;;  %v570_v18 = vadd.f32 %v538_v62, %v437_v10  ;;  %v741_v1 = vmul.f32 %v2105_v19, %v2379_v21 }
  0x6a   : > { %1309 = vst.msk [vmem:[%s2216_s21 + $0x38] sm:$0xff] %vm269_vm0, %v1277_v14  ;;  %v1347_v54 = vsel %vm269_vm0, %v1277_v14, 0.0  ;;  %v1412_v28 = vmul.f32 %v1277_v14, %v1277_v14  ;;  %v1177_v41 = vadd.f32 %v1145_v35, %v1076_v15  ;;  %v873_v33 = vadd.f32 %v841_v61, %v772_v16 }
  0x6b   : > { %v1348_v34 = vadd.f32 %v1347_v54, %v1346_v3  ;;  %v671_v52 = vadd.f32 %v639_v12, %v570_v18  ;;  %v842_v36 = vmul.f32 %v2113_v23, %v2385_v49  ;;  %v943_v37 = vmul.f32 %v2118_v24, %v2387_v51  ;;  %v2462_v12 = vld [vmem:[#allocation2 + $0xb0] sm:$0xff] }
  0x6c   : > { %v1450_v22 = vsel %vm269_vm0, %v1412_v28, 0.0  ;;  %v1278_v32 = vadd.f32 %v1246_v45, %v1177_v41  ;;  %v974_v40 = vadd.f32 %v942_v63, %v873_v33  ;;  %v1046_v42 = vmul.f32 %v2123_v25, %v2434_v38  ;;  %v2475_v54 = vld [vmem:[#allocation2 + $0xb1] sm:$0xff] }
  0x6d   : > { %v1451_v31 = vadd.f32 %v1450_v22, %v1449_v13  ;;  %v773_v43 = vadd.f32 %v741_v1, %v671_v52  ;;  %v438_v48 = vmul.f32 %v2072_v7, %v2347_v57  ;;  %v539_v50 = vmul.f32 %v2077_v8, %v2355_v2 }
  0x6e   : > { %1310 = vst.msk [vmem:[%s2216_s21 + $0x40] sm:$0xff] %vm269_vm0, %v1278_v32  ;;  %v1349_v60 = vsel %vm269_vm0, %v1278_v32, 0.0  ;;  %v1413_v53 = vmul.f32 %v1278_v32, %v1278_v32  ;;  %v1077_v35 = vadd.f32 %v1045_v0, %v974_v40  ;;  %v640_v45 = vmul.f32 %v2082_v9, %v2370_v30  ;;  %v1211_v0 = vld [vmem:[#allocation2 + $0xaa] sm:$0xff] }
  0x6f   : > { %v1350_v58 = vadd.f32 %v1349_v60, %v1348_v34  ;;  %v874_v44 = vadd.f32 %v842_v36, %v773_v43  ;;  %v571_v4 = vadd.f32 %v539_v50, %v438_v48  ;;  %v742_v57 = vmul.f32 %v2105_v19, %v2401_v20 }
  0x70   : > { %v1452_v61 = vsel %vm269_vm0, %v1413_v53, 0.0  ;;  %v1178_v2 = vadd.f32 %v1146_v27, %v1077_v35  ;;  %v1147_v26 = vmul.f32 %v2131_v29, %v2448_v59  ;;  %v843_v30 = vmul.f32 %v2113_v23, %v2417_v17  ;;  %v2496_v35 = vld [vmem:[#allocation2 + $0xc0] sm:$0xff] }
  0x71   : > { %v1453_v47 = vadd.f32 %v1452_v61, %v1451_v31  ;;  %v975_v63 = vadd.f32 %v943_v37, %v874_v44  ;;  %v672_v3 = vadd.f32 %v640_v45, %v571_v4  ;;  %v1248_v55 = vmul.f32 %v2148_v46, %v1211_v0  ;;  %v2503_v4 = vld [vmem:[#allocation2 + $0xc1] sm:$0xff] }
  0x72   : > { %v1279_v5 = vadd.f32 %v1247_v39, %v1178_v2  ;;  %v944_v6 = vmul.f32 %v2118_v24, %v2419_v11  ;;  %v439_v56 = vmul.f32 %v2072_v7, %v2379_v21  ;;  %v540_v13 = vmul.f32 %v2077_v8, %v2385_v49  ;;  %v2477_v49 = vld [vmem:[#allocation2 + $0xb2] sm:$0xff]  ;;  %v2507_v2 = vld [vmem:[#allocation2 + $0xc2] sm:$0xff] }
  0x73   : > { %v1078_v10 = vadd.f32 %v1046_v42, %v975_v63  ;;  %v774_v62 = vadd.f32 %v742_v57, %v672_v3  ;;  %v641_v14 = vmul.f32 %v2082_v9, %v2387_v51  ;;  %v1047_v27 = vmul.f32 %v2123_v25, %v2462_v12 }
  0x74   : > { %1311 = vst.msk [vmem:[%s2216_s21 + $0x48] sm:$0xff] %vm269_vm0, %v1279_v5  ;;  %v1351_v15 = vsel %vm269_vm0, %v1279_v5, 0.0  ;;  %v1414_v16 = vmul.f32 %v1279_v5, %v1279_v5  ;;  %v743_v21 = vmul.f32 %v2105_v19, %v2434_v38  ;;  %v572_v51 = vadd.f32 %v540_v13, %v439_v56  ;;  %v2517_v56 = vld [vmem:[#allocation2 + $0xc8] sm:$0xff] }
  0x75   : > { %v1352_v39 = vadd.f32 %v1351_v15, %v1350_v58  ;;  %v1179_v18 = vadd.f32 %v1147_v26, %v1078_v10  ;;  %v875_v1 = vadd.f32 %v843_v30, %v774_v62  ;;  %v1148_v41 = vmul.f32 %v2131_v29, %v2475_v54 }
  0x76   : > { %v1454_v28 = vsel %vm269_vm0, %v1414_v16, 0.0  ;;  %v1249_v33 = vmul.f32 %v2148_v46, %v2477_v49  ;;  %v844_v34 = vmul.f32 %v2113_v23, %v2448_v59  ;;  %v673_v22 = vadd.f32 %v641_v14, %v572_v51 }
  0x77   : > { %v1455_v52 = vadd.f32 %v1454_v28, %v1453_v47  ;;  %v1280_v36 = vadd.f32 %v1248_v55, %v1179_v18  ;;  %v976_v37 = vadd.f32 %v944_v6, %v875_v1  ;;  %v945_v32 = vmul.f32 %v2118_v24, %v1211_v0 }
  0x78   : > { %v440_v40 = vmul.f32 %v2072_v7, %v2401_v20  ;;  %v541_v42 = vmul.f32 %v2077_v8, %v2417_v17  ;;  %v642_v31 = vmul.f32 %v2082_v9, %v2419_v11  ;;  %v775_v60 = vadd.f32 %v743_v21, %v673_v22  ;;  %v2527_v21 = vld [vmem:[#allocation2 + $0xc9] sm:$0xff] }
  0x79   : > { %1312 = vst.msk [vmem:[%s2216_s21 + $0x50] sm:$0xff] %vm269_vm0, %v1280_v36  ;;  %v1353_v43 = vsel %vm269_vm0, %v1280_v36, 0.0  ;;  %v1415_v48 = vmul.f32 %v1280_v36, %v1280_v36  ;;  %v1079_v50 = vadd.f32 %v1047_v27, %v976_v37  ;;  %v744_v20 = vmul.f32 %v2105_v19, %v2462_v12  ;;  %v2540_v37 = vld [vmem:[#allocation2 + $0xd8] sm:$0xff] }
  0x7a   : > { %v1354_v53 = vadd.f32 %v1353_v43, %v1352_v39  ;;  %v573_v45 = vadd.f32 %v541_v42, %v440_v40  ;;  %v876_v44 = vadd.f32 %v844_v34, %v775_v60  ;;  %v1048_v11 = vmul.f32 %v2123_v25, %v2496_v35  ;;  %v2529_v39 = vld [vmem:[#allocation2 + $0xca] sm:$0xff] }
  0x7b   : > { %v1456_v58 = vsel %vm269_vm0, %v1415_v48, 0.0  ;;  %v1180_v17 = vadd.f32 %v1148_v41, %v1079_v50  ;;  %v1149_v61 = vmul.f32 %v2131_v29, %v2503_v4  ;;  %v845_v47 = vmul.f32 %v2113_v23, %v2475_v54 }
  0x7c   : > { %v1457_v57 = vadd.f32 %v1456_v58, %v1455_v52  ;;  %v674_v26 = vadd.f32 %v642_v31, %v573_v45  ;;  %v977_v3 = vadd.f32 %v945_v32, %v876_v44  ;;  %v1250_v30 = vmul.f32 %v2148_v46, %v2507_v2 }
  0x7d   : > { %v1281_v63 = vadd.f32 %v1249_v33, %v1180_v17  ;;  %v441_v5 = vmul.f32 %v2072_v7, %v2434_v38  ;;  %v946_v6 = vmul.f32 %v2118_v24, %v2477_v49  ;;  %v542_v10 = vmul.f32 %v2077_v8, %v2448_v59  ;;  %v1215_v17 = vld [vmem:[#allocation2 + $0xda] sm:$0xff] }
  0x7e   : > { %v776_v55 = vadd.f32 %v744_v20, %v674_v26  ;;  %v643_v62 = vmul.f32 %v2082_v9, %v1211_v0  ;;  %v1080_v15 = vadd.f32 %v1048_v11, %v977_v3  ;;  %v1049_v38 = vmul.f32 %v2123_v25, %v2517_v56 }
  0x7f   : > { %1313 = vst.msk [vmem:[%s2216_s21 + $0x58] sm:$0xff] %vm269_vm0, %v1281_v63  ;;  %v1355_v13 = vsel %vm269_vm0, %v1281_v63, 0.0  ;;  %v1416_v14 = vmul.f32 %v1281_v63, %v1281_v63  ;;  %v574_v18 = vadd.f32 %v542_v10, %v441_v5  ;;  %v745_v59 = vmul.f32 %v2105_v19, %v2496_v35 }
  0x80   : > { %v1356_v16 = vadd.f32 %v1355_v13, %v1354_v53  ;;  %v877_v27 = vadd.f32 %v845_v47, %v776_v55  ;;  %v1181_v1 = vadd.f32 %v1149_v61, %v1080_v15  ;;  %v1150_v51 = vmul.f32 %v2131_v29, %v2527_v21  ;;  %v2569_v55 = vld [vmem:[#allocation2 + $0xe0] sm:$0xff] }
  0x81   : > { %v1458_v0 = vsel %vm269_vm0, %v1416_v14, 0.0  ;;  %v1251_v28 = vmul.f32 %v2148_v46, %v2529_v39  ;;  %v675_v34 = vadd.f32 %v643_v62, %v574_v18  ;;  %v846_v52 = vmul.f32 %v2113_v23, %v2503_v4 }
  0x82   : > { %v1459_v41 = vadd.f32 %v1458_v0, %v1457_v57  ;;  %v978_v33 = vadd.f32 %v946_v6, %v877_v27  ;;  %v1282_v36 = vadd.f32 %v1250_v30, %v1181_v1  ;;  %v442_v22 = vmul.f32 %v2072_v7, %v2462_v12  ;;  %v2555_v12 = vld [vmem:[#allocation2 + $0xd9] sm:$0xff] }
  0x83   : > { %v543_v32 = vmul.f32 %v2077_v8, %v2475_v54  ;;  %v644_v40 = vmul.f32 %v2082_v9, %v2477_v49  ;;  %v777_v31 = vadd.f32 %v745_v59, %v675_v34  ;;  %v947_v43 = vmul.f32 %v2118_v24, %v2507_v2 }
  0x84   : > { %v1081_v42 = vadd.f32 %v1049_v38, %v978_v33  ;;  %v1050_v48 = vmul.f32 %v2123_v25, %v2540_v37  ;;  %1314 = vst.msk [vmem:[%s2216_s21 + $0x60] sm:$0xff] %vm269_vm0, %v1282_v36  ;;  %v1357_v50 = vsel %vm269_vm0, %v1282_v36, 0.0  ;;  %v1417_v60 = vmul.f32 %v1282_v36, %v1282_v36  ;;  %v1216_v33 = vld [vmem:[#allocation2 + $0xe2] sm:$0xff] }
  0x85   : > { %v575_v53 = vadd.f32 %v543_v32, %v442_v22  ;;  %v746_v54 = vmul.f32 %v2105_v19, %v2517_v56  ;;  %v1358_v49 = vadd.f32 %v1357_v50, %v1356_v16  ;;  %v878_v20 = vadd.f32 %v846_v52, %v777_v31  ;;  %v2580_v16 = vld [vmem:[#allocation2 + $0xe1] sm:$0xff]  ;;  %v2601_v31 = vld [vmem:[#allocation2 + $0xf0] sm:$0xff] }
  0x86   : > { %v1182_v45 = vadd.f32 %v1150_v51, %v1081_v42  ;;  %v1151_v58 = vmul.f32 %v2131_v29, %v2555_v12  ;;  %v1460_v44 = vsel %vm269_vm0, %v1417_v60, 0.0  ;;  %v1252_v11 = vmul.f32 %v2148_v46, %v1215_v17 }
  0x87   : > { %v676_v57 = vadd.f32 %v644_v40, %v575_v53  ;;  %v847_v61 = vmul.f32 %v2113_v23, %v2527_v21  ;;  %v1461_v26 = vadd.f32 %v1460_v44, %v1459_v41  ;;  %v979_v63 = vadd.f32 %v947_v43, %v878_v20 }
  0x88   : > { %v1283_v47 = vadd.f32 %v1251_v28, %v1182_v45  ;;  %v443_v3 = vmul.f32 %v2072_v7, %v2496_v35  ;;  %v948_v5 = vmul.f32 %v2118_v24, %v2529_v39  ;;  %v544_v6 = vmul.f32 %v2077_v8, %v2503_v4 }
  0x89   : > { %v778_v30 = vadd.f32 %v746_v54, %v676_v57  ;;  %v645_v10 = vmul.f32 %v2082_v9, %v2507_v2  ;;  %v1082_v14 = vadd.f32 %v1050_v48, %v979_v63  ;;  %v1051_v35 = vmul.f32 %v2123_v25, %v2569_v55 }
  0x8a   : > { %1315 = vst.msk [vmem:[%s2216_s21 + $0x68] sm:$0xff] %vm269_vm0, %v1283_v47  ;;  %v1359_v62 = vsel %vm269_vm0, %v1283_v47, 0.0  ;;  %v1418_v13 = vmul.f32 %v1283_v47, %v1283_v47  ;;  %v576_v27 = vadd.f32 %v544_v6, %v443_v3  ;;  %v747_v4 = vmul.f32 %v2105_v19, %v2540_v37  ;;  %v2630_v6 = vld [vmem:[#allocation2 + $0xf9] sm:$0xff] }
  0x8b   : > { %v1360_v15 = vadd.f32 %v1359_v62, %v1358_v49  ;;  %v879_v38 = vadd.f32 %v847_v61, %v778_v30  ;;  %v1183_v2 = vadd.f32 %v1151_v58, %v1082_v14  ;;  %v1152_v59 = vmul.f32 %v2131_v29, %v2580_v16 }
  0x8c   : > { %v1462_v18 = vsel %vm269_vm0, %v1418_v13, 0.0  ;;  %v677_v51 = vadd.f32 %v645_v10, %v576_v27  ;;  %v848_v28 = vmul.f32 %v2113_v23, %v2555_v12  ;;  %v444_v34 = vmul.f32 %v2072_v7, %v2517_v56  ;;  %v2632_v10 = vld [vmem:[#allocation2 + $0xfa] sm:$0xff] }
  0x8d   : > { %v2587_v0 = vadd.f32 %v1462_v18, %v1461_v26  ;;  %v980_v1 = vadd.f32 %v948_v5, %v879_v38  ;;  %v1284_v41 = vadd.f32 %v1252_v11, %v1183_v2  ;;  %v545_v52 = vmul.f32 %v2077_v8, %v2527_v21  ;;  %v2616_v11 = vld [vmem:[#allocation2 + $0xf2] sm:$0xff] }
  0x8e   : > { %v646_v36 = vmul.f32 %v2082_v9, %v2529_v39  ;;  %v1253_v32 = vmul.f32 %v2148_v46, %v1216_v33  ;;  %v779_v40 = vadd.f32 %v747_v4, %v677_v51  ;;  %v949_v42 = vmul.f32 %v2118_v24, %v1215_v17  ;;  %v2607_v39 = vld [vmem:[#allocation2 + $0xf1] sm:$0xff] }
  0x8f   : > { %v1083_v22 = vadd.f32 %v1051_v35, %v980_v1  ;;  %1316 = vst.msk [vmem:[%s2216_s21 + $0x70] sm:$0xff] %vm269_vm0, %v1284_v41  ;;  %v577_v43 = vadd.f32 %v545_v52, %v444_v34  ;;  %v748_v56 = vmul.f32 %v2105_v19, %v2569_v55  ;;  %v1052_v21 = vmul.f32 %v2123_v25, %v2601_v31  ;;  %v2626_v5 = vld [vmem:[#allocation2 + $0xf8] sm:$0xff]  ;;  %v2674_v34 = vld [vmem:[%s3104_s1 + $0x4] ss:$0 sm:$0xff] }
  0x90   : > { %v880_v50 = vadd.f32 %v848_v28, %v779_v40  ;;  %v1361_v60 = vsel %vm269_vm0, %v1284_v41, 0.0  ;;  %v1153_v53 = vmul.f32 %v2131_v29, %v2607_v39  ;;  %v849_v49 = vmul.f32 %v2113_v23, %v2580_v16 }
  0x91   : > { %v1184_v48 = vadd.f32 %v1152_v59, %v1083_v22  ;;  %v678_v54 = vadd.f32 %v646_v36, %v577_v43  ;;  %v1419_v45 = vmul.f32 %v1284_v41, %v1284_v41  ;;  %v445_v44 = vmul.f32 %v2072_v7, %v2540_v37 }
  0x92   : > { %v981_v58 = vadd.f32 %v949_v42, %v880_v50  ;;  %v950_v61 = vmul.f32 %v2118_v24, %v1216_v33  ;;  %v546_v26 = vmul.f32 %v2077_v8, %v2555_v12  ;;  %v647_v47 = vmul.f32 %v2082_v9, %v1215_v17  ;;  %v2692_v42 = vld [vmem:[%s3104_s1 + $0x9] ss:$0 sm:$0xff] }
  0x93   : > { %v1285_v20 = vadd.f32 %v1253_v32, %v1184_v48  ;;  %v780_v57 = vadd.f32 %v748_v56, %v678_v54  ;;  %v1362_v63 = vadd.f32 %v1361_v60, %v1360_v15  ;;  %v1254_v30 = vmul.f32 %v2148_v46, %v2616_v11  ;;  %v2686_v32 = vld [vmem:[#allocation2 + $0x109] sm:$0xff]  ;;  %v2699_v48 = vld [vmem:[%s3104_s1 + $0x5] ss:$0 sm:$0xff] }
  0x94   : > { %v1084_v3 = vadd.f32 %v1052_v21, %v981_v58  ;;  %v1053_v37 = vmul.f32 %v2123_v25, %v2626_v5  ;;  %v578_v8 = vadd.f32 %v546_v26, %v445_v44  ;;  %v749_v9 = vmul.f32 %v2105_v19, %v2601_v31  ;;  %v2646_v19 = vld [vmem:[%s3104_s1] ss:$0 sm:$0xff] }
  0x95   : > { %1317 = vst.msk [vmem:[%s2216_s21 + $0x78] sm:$0xff] %vm269_vm0, %v1285_v20  ;;  %v881_v7 = vadd.f32 %v849_v49, %v780_v57  ;;  %v1464_v12 = vsel %vm269_vm0, %v1419_v45, 0.0  ;;  %v1154_v62 = vmul.f32 %v2131_v29, %v2630_v6  ;;  %v1255_v13 = vmul.f32 %v2148_v46, %v2632_v10  ;;  %v2653_v29 = vld [vmem:[%s3104_s1 + $0x1] ss:$0 sm:$0xff]  ;;  %v1219_v49 = vld [vmem:[#allocation2 + $0x10a] sm:$0xff] }
  0x96   : > { %v1185_v17 = vadd.f32 %v1153_v53, %v1084_v3  ;;  %v1420_v14 = vmul.f32 %v1285_v20, %v1285_v20  ;;  %v679_v25 = vadd.f32 %v647_v47, %v578_v8  ;;  %v850_v15 = vmul.f32 %v2113_v23, %v2607_v39  ;;  %v2660_v23 = vld [vmem:[%s3104_s1 + $0x2] ss:$0 sm:$0xff] }
  0x97   : > { %v982_v35 = vadd.f32 %v950_v61, %v881_v7  ;;  %v446_v27 = vmul.f32 %v2646_v19, %v2569_v55  ;;  %v547_v4 = vmul.f32 %v2653_v29, %v2580_v16  ;;  %v648_v18 = vmul.f32 %v2660_v23, %v1216_v33  ;;  %v2669_v16 = vld [vmem:[#allocation2 + $0x108] sm:$0xff]  ;;  %v2723_v7 = vld [vmem:[#allocation2 + $0x111] sm:$0xff] }
  0x98   : > { %v1286_v38 = vadd.f32 %v1254_v30, %v1185_v17  ;;  %v1363_v2 = vsel %vm269_vm0, %v1285_v20, 0.0  ;;  %v781_v1 = vadd.f32 %v749_v9, %v679_v25  ;;  %v951_v55 = vmul.f32 %v2118_v24, %v2616_v11  ;;  %v2708_v20 = vld [vmem:[%s3104_s1 + $0x6] ss:$0 sm:$0xff] }
  0x99   : > { %v1085_v59 = vadd.f32 %v1053_v37, %v982_v35  ;;  %v1465_v51 = vadd.f32 %v1464_v12, %v2587_v0  ;;  %v1364_v28 = vadd.f32 %v1363_v2, %v1362_v63  ;;  %v579_v41 = vadd.f32 %v547_v4, %v446_v27  ;;  %v2682_v0 = vld [vmem:[%s3104_s1 + $0x8] ss:$0 sm:$0xff]  ;;  %v2719_v63 = vld [vmem:[#allocation2 + $0x110] sm:$0xff]  ;;  %v2735_v12 = vld [vmem:[%s3104_s1 + $0xa] ss:$0 sm:$0xff] }
  0x9a   : > { %1318 = vst.msk [vmem:[%s2216_s21 + $0x80] sm:$0xff] %vm269_vm0, %v1286_v38  ;;  %v750_v33 = vmul.f32 %v2674_v34, %v2626_v5  ;;  %v1466_v52 = vsel %vm269_vm0, %v1420_v14, 0.0  ;;  %v882_v24 = vadd.f32 %v850_v15, %v781_v1  ;;  %v1054_v22 = vmul.f32 %v2682_v0, %v2669_v16  ;;  %v2725_v37 = vld [vmem:[#allocation2 + $0x112] sm:$0xff] }
  0x9b   : > { %v1186_v36 = vadd.f32 %v1154_v62, %v1085_v59  ;;  %v1365_v40 = vsel %vm269_vm0, %v1286_v38, 0.0  ;;  %v1155_v43 = vmul.f32 %v2692_v42, %v2686_v32  ;;  %v680_v56 = vadd.f32 %v648_v18, %v579_v41 }
  0x9c   : > { %v851_v50 = vmul.f32 %v2699_v48, %v2630_v6  ;;  %v1421_v21 = vmul.f32 %v1286_v38, %v1286_v38  ;;  %v983_v53 = vadd.f32 %v951_v55, %v882_v24  ;;  %v447_v54 = vmul.f32 %v2646_v19, %v2601_v31 }
  0x9d   : > { %v1287_v60 = vadd.f32 %v1255_v13, %v1186_v36  ;;  %v782_v45 = vadd.f32 %v750_v33, %v680_v56  ;;  %v952_v58 = vmul.f32 %v2708_v20, %v2632_v10  ;;  %v548_v44 = vmul.f32 %v2653_v29, %v2607_v39 }
  0x9e   : > { %v649_v57 = vmul.f32 %v2660_v23, %v2616_v11  ;;  %v1467_v61 = vadd.f32 %v1466_v52, %v1465_v51  ;;  %v1366_v26 = vadd.f32 %v1365_v40, %v1364_v28  ;;  %v1086_v31 = vadd.f32 %v1054_v22, %v983_v53  ;;  %v2751_v51 = vld [vmem:[#allocation2 + $0x120] sm:$0xff] }
  0x9f   : > { %1319 = vst.msk [vmem:[%s2216_s21 + $0x88] sm:$0xff] %vm269_vm0, %v1287_v60  ;;  %v1256_v47 = vmul.f32 %v2148_v46, %v1219_v49  ;;  %v883_v3 = vadd.f32 %v851_v50, %v782_v45  ;;  %v1055_v30 = vmul.f32 %v2682_v0, %v2719_v63  ;;  %v580_v39 = vadd.f32 %v548_v44, %v447_v54  ;;  %v2758_v52 = vld [vmem:[#allocation2 + $0x121] sm:$0xff] }
  0xa0   : > { %v751_v11 = vmul.f32 %v2674_v34, %v2669_v16  ;;  %v1468_v8 = vsel %vm269_vm0, %v1421_v21, 0.0  ;;  %v1187_v9 = vadd.f32 %v1155_v43, %v1086_v31  ;;  %v1156_v46 = vmul.f32 %v2692_v42, %v2723_v7  ;;  %v2775_v31 = vld [vmem:[#allocation2 + $0x128] sm:$0xff] }
  0xa1   : > { %v1257_v17 = vmul.f32 %v2735_v12, %v2725_v37  ;;  %v1422_v62 = vmul.f32 %v1287_v60, %v1287_v60  ;;  %v984_v13 = vadd.f32 %v952_v58, %v883_v3  ;;  %v681_v14 = vadd.f32 %v649_v57, %v580_v39  ;;  %v2779_v3 = vld [vmem:[#allocation2 + $0x129] sm:$0xff] }
  0xa2   : > { %v852_v35 = vmul.f32 %v2699_v48, %v2686_v32  ;;  %v1288_v25 = vadd.f32 %v1256_v47, %v1187_v9  ;;  %v448_v15 = vmul.f32 %v2646_v19, %v2626_v5  ;;  %v549_v38 = vmul.f32 %v2653_v29, %v2630_v6 }
  0xa3   : > { %v650_v27 = vmul.f32 %v2660_v23, %v2632_v10  ;;  %v1367_v4 = vsel %vm269_vm0, %v1287_v60, 0.0  ;;  %v1087_v18 = vadd.f32 %v1055_v30, %v984_v13  ;;  %v783_v2 = vadd.f32 %v751_v11, %v681_v14  ;;  %v1221_v60 = vld [vmem:[#allocation2 + $0x122] sm:$0xff]  ;;  %v2781_v30 = vld [vmem:[#allocation2 + $0x12a] sm:$0xff] }
  0xa4   : > { %v953_v59 = vmul.f32 %v2708_v20, %v1219_v49  ;;  %v1469_v1 = vadd.f32 %v1468_v8, %v1467_v61  ;;  %v1368_v55 = vadd.f32 %v1367_v4, %v1366_v26  ;;  %1320 = vst.msk [vmem:[%s2216_s21 + $0x90] sm:$0xff] %vm269_vm0, %v1288_v25  ;;  %v581_v28 = vadd.f32 %v549_v38, %v448_v15 }
  0xa5   : > { %v752_v5 = vmul.f32 %v2674_v34, %v2719_v63  ;;  %v1470_v6 = vsel %vm269_vm0, %v1422_v62, 0.0  ;;  %v1188_v41 = vadd.f32 %v1156_v46, %v1087_v18  ;;  %v884_v10 = vadd.f32 %v852_v35, %v783_v2 }
  0xa6   : > { %v1056_v33 = vmul.f32 %v2682_v0, %v2751_v51  ;;  %v1369_v36 = vsel %vm269_vm0, %v1288_v25, 0.0  ;;  %v1157_v24 = vmul.f32 %v2692_v42, %v2758_v52  ;;  %v682_v22 = vadd.f32 %v650_v27, %v581_v28 }
  0xa7   : > { %v853_v40 = vmul.f32 %v2699_v48, %v2723_v7  ;;  %v1423_v43 = vmul.f32 %v1288_v25, %v1288_v25  ;;  %v1289_v56 = vadd.f32 %v1257_v17, %v1188_v41  ;;  %v985_v50 = vadd.f32 %v953_v59, %v884_v10 }
  0xa8   : > { %v449_v21 = vmul.f32 %v2646_v19, %v2669_v16  ;;  %v784_v53 = vadd.f32 %v752_v5, %v682_v22  ;;  %v954_v54 = vmul.f32 %v2708_v20, %v2725_v37  ;;  %v550_v45 = vmul.f32 %v2653_v29, %v2686_v32 }
  0xa9   : > { %v651_v58 = vmul.f32 %v2660_v23, %v1219_v49  ;;  %v1471_v44 = vadd.f32 %v1470_v6, %v1469_v1  ;;  %v1370_v57 = vadd.f32 %v1369_v36, %v1368_v55  ;;  %1321 = vst.msk [vmem:[%s2216_s21 + $0x98] sm:$0xff] %vm269_vm0, %v1289_v56  ;;  %v1088_v61 = vadd.f32 %v1056_v33, %v985_v50  ;;  %v2802_v1 = vld [vmem:[#allocation2 + $0x138] sm:$0xff] }
  0xaa   : > { %v1258_v26 = vmul.f32 %v2735_v12, %v1221_v60  ;;  %v885_v16 = vadd.f32 %v853_v40, %v784_v53  ;;  %v1057_v47 = vmul.f32 %v2682_v0, %v2775_v31  ;;  %v582_v32 = vadd.f32 %v550_v45, %v449_v21  ;;  %v2809_v6 = vld [vmem:[#allocation2 + $0x139] sm:$0xff] }
  0xab   : > { %v753_v49 = vmul.f32 %v2674_v34, %v2751_v51  ;;  %v1472_v39 = vsel %vm269_vm0, %v1423_v43, 0.0  ;;  %v1189_v11 = vadd.f32 %v1157_v24, %v1088_v61  ;;  %v1158_v8 = vmul.f32 %v2692_v42, %v2779_v3  ;;  %v2826_v61 = vld [vmem:[#allocation2 + $0x140] sm:$0xff] }
  0xac   : > { %v1259_v9 = vmul.f32 %v2735_v12, %v2781_v30  ;;  %v1424_v46 = vmul.f32 %v1289_v56, %v1289_v56  ;;  %v986_v17 = vadd.f32 %v954_v54, %v885_v16  ;;  %v683_v62 = vadd.f32 %v651_v58, %v582_v32  ;;  %v2830_v16 = vld [vmem:[#allocation2 + $0x141] sm:$0xff] }
  0xad   : > { %v854_v13 = vmul.f32 %v2699_v48, %v2758_v52  ;;  %v1290_v14 = vadd.f32 %v1258_v26, %v1189_v11  ;;  %v450_v35 = vmul.f32 %v2646_v19, %v2719_v63  ;;  %v551_v25 = vmul.f32 %v2653_v29, %v2723_v7 }
  0xae   : > { %v652_v15 = vmul.f32 %v2660_v23, %v2725_v37  ;;  %v1371_v38 = vsel %vm269_vm0, %v1289_v56, 0.0  ;;  %v1089_v27 = vadd.f32 %v1057_v47, %v986_v17  ;;  %v785_v4 = vadd.f32 %v753_v49, %v683_v62  ;;  %v1223_v56 = vld [vmem:[#allocation2 + $0x13a] sm:$0xff]  ;;  %v2832_v47 = vld [vmem:[#allocation2 + $0x142] sm:$0xff] }
  0xaf   : > { %v955_v18 = vmul.f32 %v2708_v20, %v1221_v60  ;;  %v1473_v2 = vadd.f32 %v1472_v39, %v1471_v44  ;;  %v1372_v59 = vadd.f32 %v1371_v38, %v1370_v57  ;;  %1322 = vst.msk [vmem:[%s2216_s21 + $0xa0] sm:$0xff] %vm269_vm0, %v1290_v14  ;;  %v583_v55 = vadd.f32 %v551_v25, %v450_v35 }
  0xb0   : > { %v754_v63 = vmul.f32 %v2674_v34, %v2775_v31  ;;  %v1474_v7 = vsel %vm269_vm0, %v1424_v46, 0.0  ;;  %v1190_v28 = vadd.f32 %v1158_v8, %v1089_v27  ;;  %v886_v37 = vadd.f32 %v854_v13, %v785_v4 }
  0xb1   : > { %v1058_v5 = vmul.f32 %v2682_v0, %v2802_v1  ;;  %v1373_v41 = vsel %vm269_vm0, %v1290_v14, 0.0  ;;  %v1159_v10 = vmul.f32 %v2692_v42, %v2809_v6  ;;  %v684_v33 = vadd.f32 %v652_v15, %v583_v55 }
  0xb2   : > { %v855_v36 = vmul.f32 %v2699_v48, %v2779_v3  ;;  %v1425_v24 = vmul.f32 %v1290_v14, %v1290_v14  ;;  %v1291_v22 = vadd.f32 %v1259_v9, %v1190_v28  ;;  %v987_v40 = vadd.f32 %v955_v18, %v886_v37 }
  0xb3   : > { %v451_v43 = vmul.f32 %v2646_v19, %v2751_v51  ;;  %v786_v50 = vadd.f32 %v754_v63, %v684_v33  ;;  %v956_v21 = vmul.f32 %v2708_v20, %v2781_v30  ;;  %v552_v53 = vmul.f32 %v2653_v29, %v2758_v52 }
  0xb4   : > { %v653_v54 = vmul.f32 %v2660_v23, %v1221_v60  ;;  %v1475_v45 = vadd.f32 %v1474_v7, %v1473_v2  ;;  %v1374_v58 = vadd.f32 %v1373_v41, %v1372_v59  ;;  %1323 = vst.msk [vmem:[%s2216_s21 + $0xa8] sm:$0xff] %vm269_vm0, %v1291_v22  ;;  %v1090_v44 = vadd.f32 %v1058_v5, %v987_v40  ;;  %v2853_v2 = vld [vmem:[#allocation2 + $0x150] sm:$0xff] }
  0xb5   : > { %v1260_v57 = vmul.f32 %v2735_v12, %v1223_v56  ;;  %v887_v51 = vadd.f32 %v855_v36, %v786_v50  ;;  %v1059_v26 = vmul.f32 %v2682_v0, %v2826_v61  ;;  %v584_v52 = vadd.f32 %v552_v53, %v451_v43  ;;  %v2860_v7 = vld [vmem:[#allocation2 + $0x151] sm:$0xff] }
  0xb6   : > { %v755_v60 = vmul.f32 %v2674_v34, %v2802_v1  ;;  %v1476_v32 = vsel %vm269_vm0, %v1425_v24, 0.0  ;;  %v1191_v49 = vadd.f32 %v1159_v10, %v1090_v44  ;;  %v1160_v39 = vmul.f32 %v2692_v42, %v2830_v16  ;;  %v2877_v44 = vld [vmem:[#allocation2 + $0x158] sm:$0xff] }
  0xb7   : > { %v1261_v11 = vmul.f32 %v2735_v12, %v2832_v47  ;;  %v1426_v8 = vmul.f32 %v1291_v22, %v1291_v22  ;;  %v988_v9 = vadd.f32 %v956_v21, %v887_v51  ;;  %v685_v46 = vadd.f32 %v653_v54, %v584_v52  ;;  %v2881_v51 = vld [vmem:[#allocation2 + $0x159] sm:$0xff] }
  0xb8   : > { %v856_v17 = vmul.f32 %v2699_v48, %v2809_v6  ;;  %v1292_v62 = vadd.f32 %v1260_v57, %v1191_v49  ;;  %v452_v13 = vmul.f32 %v2646_v19, %v2775_v31  ;;  %v553_v14 = vmul.f32 %v2653_v29, %v2779_v3 }
  0xb9   : > { %v654_v35 = vmul.f32 %v2660_v23, %v2781_v30  ;;  %v1375_v25 = vsel %vm269_vm0, %v1291_v22, 0.0  ;;  %v1091_v15 = vadd.f32 %v1059_v26, %v988_v9  ;;  %v787_v38 = vadd.f32 %v755_v60, %v685_v46  ;;  %v1225_v22 = vld [vmem:[#allocation2 + $0x152] sm:$0xff]  ;;  %v2883_v26 = vld [vmem:[#allocation2 + $0x15a] sm:$0xff] }
  0xba   : > { %v957_v27 = vmul.f32 %v2708_v20, %v1223_v56  ;;  %v1477_v4 = vadd.f32 %v1476_v32, %v1475_v45  ;;  %v1376_v18 = vadd.f32 %v1375_v25, %v1374_v58  ;;  %1324 = vst.msk [vmem:[%s2216_s21 + $0xb0] sm:$0xff] %vm269_vm0, %v1292_v62  ;;  %v585_v59 = vadd.f32 %v553_v14, %v452_v13 }
  0xbb   : > { %v756_v31 = vmul.f32 %v2674_v34, %v2826_v61  ;;  %v1478_v3 = vsel %vm269_vm0, %v1426_v8, 0.0  ;;  %v1192_v55 = vadd.f32 %v1160_v39, %v1091_v15  ;;  %v888_v30 = vadd.f32 %v856_v17, %v787_v38 }
  0xbc   : > { %v1060_v63 = vmul.f32 %v2682_v0, %v2853_v2  ;;  %v1377_v28 = vsel %vm269_vm0, %v1292_v62, 0.0  ;;  %v1161_v37 = vmul.f32 %v2692_v42, %v2860_v7  ;;  %v686_v5 = vadd.f32 %v654_v35, %v585_v59 }
  0xbd   : > { %v857_v41 = vmul.f32 %v2699_v48, %v2830_v16  ;;  %v1427_v10 = vmul.f32 %v1292_v62, %v1292_v62  ;;  %v1293_v33 = vadd.f32 %v1261_v11, %v1192_v55  ;;  %v989_v36 = vadd.f32 %v957_v27, %v888_v30 }
  0xbe   : > { %v453_v24 = vmul.f32 %v2646_v19, %v2802_v1  ;;  %v788_v40 = vadd.f32 %v756_v31, %v686_v5  ;;  %v958_v43 = vmul.f32 %v2708_v20, %v2832_v47  ;;  %v554_v50 = vmul.f32 %v2653_v29, %v2809_v6 }
  0xbf   : > { %v655_v21 = vmul.f32 %v2660_v23, %v1223_v56  ;;  %v1479_v53 = vadd.f32 %v1478_v3, %v1477_v4  ;;  %v1378_v54 = vadd.f32 %v1377_v28, %v1376_v18  ;;  %1325 = vst.msk [vmem:[%s2216_s21 + $0xb8] sm:$0xff] %vm269_vm0, %v1293_v33  ;;  %v1092_v45 = vadd.f32 %v1060_v63, %v989_v36  ;;  %v2904_v4 = vld [vmem:[#allocation2 + $0x168] sm:$0xff] }
  0xc0   : > { %v1262_v58 = vmul.f32 %v2735_v12, %v1225_v22  ;;  %v889_v1 = vadd.f32 %v857_v41, %v788_v40  ;;  %v1061_v57 = vmul.f32 %v2682_v0, %v2877_v44  ;;  %v586_v6 = vadd.f32 %v554_v50, %v453_v24  ;;  %v2911_v3 = vld [vmem:[#allocation2 + $0x169] sm:$0xff] }
  0xc1   : > { %v757_v56 = vmul.f32 %v2674_v34, %v2853_v2  ;;  %v1480_v52 = vsel %vm269_vm0, %v1427_v10, 0.0  ;;  %v1193_v60 = vadd.f32 %v1161_v37, %v1092_v45  ;;  %v1162_v32 = vmul.f32 %v2692_v42, %v2881_v51  ;;  %v2928_v45 = vld [vmem:[#allocation2 + $0x170] sm:$0xff] }
  0xc2   : > { %v1263_v49 = vmul.f32 %v2735_v12, %v2883_v26  ;;  %v1428_v39 = vmul.f32 %v1293_v33, %v1293_v33  ;;  %v990_v11 = vadd.f32 %v958_v43, %v889_v1  ;;  %v687_v8 = vadd.f32 %v655_v21, %v586_v6  ;;  %v2932_v1 = vld [vmem:[#allocation2 + $0x171] sm:$0xff] }
  0xc3   : > { %v858_v9 = vmul.f32 %v2699_v48, %v2860_v7  ;;  %v1294_v46 = vadd.f32 %v1262_v58, %v1193_v60  ;;  %v454_v17 = vmul.f32 %v2646_v19, %v2826_v61  ;;  %v555_v62 = vmul.f32 %v2653_v29, %v2830_v16 }
  0xc4   : > { %v656_v13 = vmul.f32 %v2660_v23, %v2832_v47  ;;  %v1379_v14 = vsel %vm269_vm0, %v1293_v33, 0.0  ;;  %v1093_v35 = vadd.f32 %v1061_v57, %v990_v11  ;;  %v789_v25 = vadd.f32 %v757_v56, %v687_v8  ;;  %v1227_v33 = vld [vmem:[#allocation2 + $0x16a] sm:$0xff]  ;;  %v2934_v57 = vld [vmem:[#allocation2 + $0x172] sm:$0xff] }
  0xc5   : > { %v959_v15 = vmul.f32 %v2708_v20, %v1225_v22  ;;  %v1481_v38 = vadd.f32 %v1480_v52, %v1479_v53  ;;  %v1380_v27 = vadd.f32 %v1379_v14, %v1378_v54  ;;  %1326 = vst.msk [vmem:[%s2216_s21 + $0xc0] sm:$0xff] %vm269_vm0, %v1294_v46  ;;  %v587_v18 = vadd.f32 %v555_v62, %v454_v17 }
  0xc6   : > { %v758_v61 = vmul.f32 %v2674_v34, %v2877_v44  ;;  %v1482_v16 = vsel %vm269_vm0, %v1428_v39, 0.0  ;;  %v1194_v59 = vadd.f32 %v1162_v32, %v1093_v35  ;;  %v890_v47 = vadd.f32 %v858_v9, %v789_v25  ;;  %v1026_v9 = vld [vmem:[#allocation2 + $0x180] sm:$0xff] }
  0xc7   : > { %v1062_v31 = vmul.f32 %v2682_v0, %v2904_v4  ;;  %v1381_v55 = vsel %vm269_vm0, %v1294_v46, 0.0  ;;  %v1163_v30 = vmul.f32 %v2692_v42, %v2911_v3  ;;  %v688_v63 = vadd.f32 %v656_v13, %v587_v18 }
  0xc8   : > { %v859_v28 = vmul.f32 %v2699_v48, %v2881_v51  ;;  %v1429_v37 = vmul.f32 %v1294_v46, %v1294_v46  ;;  %v1295_v5 = vadd.f32 %v1263_v49, %v1194_v59  ;;  %v991_v41 = vadd.f32 %v959_v15, %v890_v47  ;;  %v1128_v15 = vld [vmem:[#allocation2 + $0x181] sm:$0xff] }
  0xc9   : > { %v455_v10 = vmul.f32 %v2646_v19, %v2853_v2  ;;  %v790_v36 = vadd.f32 %v758_v61, %v688_v63  ;;  %v960_v24 = vmul.f32 %v2708_v20, %v2883_v26  ;;  %v556_v40 = vmul.f32 %v2653_v29, %v2860_v7 }
  0xca   : > { %v657_v43 = vmul.f32 %v2660_v23, %v1225_v22  ;;  %v1483_v50 = vadd.f32 %v1482_v16, %v1481_v38  ;;  %v1382_v21 = vadd.f32 %v1381_v55, %v1380_v27  ;;  %1327 = vst.msk [vmem:[%s2216_s21 + $0xc8] sm:$0xff] %vm269_vm0, %v1295_v5  ;;  %v1094_v53 = vadd.f32 %v1062_v31, %v991_v41  ;;  %v1229_v31 = vld [vmem:[#allocation2 + $0x182] sm:$0xff] }
  0xcb   : > { %v1264_v54 = vmul.f32 %v2735_v12, %v1227_v33  ;;  %v891_v2 = vadd.f32 %v859_v28, %v790_v36  ;;  %v1063_v58 = vmul.f32 %v2682_v0, %v2928_v45  ;;  %v588_v7 = vadd.f32 %v556_v40, %v455_v10  ;;  %v1230_v40 = vld [vmem:[#allocation2 + $0x18a] sm:$0xff] }
  0xcc   : > { %v759_v22 = vmul.f32 %v2674_v34, %v2904_v4  ;;  %v1484_v6 = vsel %vm269_vm0, %v1429_v37, 0.0  ;;  %v1195_v56 = vadd.f32 %v1163_v30, %v1094_v53  ;;  %v1164_v52 = vmul.f32 %v2692_v42, %v2932_v1 }
  0xcd   : > { %v1265_v60 = vmul.f32 %v2735_v12, %v2934_v57  ;;  %v1430_v32 = vmul.f32 %v1295_v5, %v1295_v5  ;;  %v992_v49 = vadd.f32 %v960_v24, %v891_v2  ;;  %v689_v39 = vadd.f32 %v657_v43, %v588_v7  ;;  %v1129_v24 = vld [vmem:[#allocation2 + $0x189] sm:$0xff] }
  0xce   : > { %v860_v11 = vmul.f32 %v2699_v48, %v2911_v3  ;;  %v1296_v8 = vadd.f32 %v1264_v54, %v1195_v56  ;;  %v456_v46 = vmul.f32 %v2646_v19, %v2877_v44  ;;  %v557_v17 = vmul.f32 %v2653_v29, %v2881_v51 }
  0xcf   : > { %v658_v62 = vmul.f32 %v2660_v23, %v2883_v26  ;;  %v1383_v13 = vsel %vm269_vm0, %v1295_v5, 0.0  ;;  %v1095_v14 = vadd.f32 %v1063_v58, %v992_v49  ;;  %v791_v35 = vadd.f32 %v759_v22, %v689_v39  ;;  %v1027_v5 = vld [vmem:[#allocation2 + $0x188] sm:$0xff] }
  0xd0   : > { %v961_v25 = vmul.f32 %v2708_v20, %v1227_v33  ;;  %v1485_v38 = vadd.f32 %v1484_v6, %v1483_v50  ;;  %v1384_v27 = vadd.f32 %v1383_v13, %v1382_v21  ;;  %1328 = vst.msk [vmem:[%s2216_s21 + $0xd0] sm:$0xff] %vm269_vm0, %v1296_v8  ;;  %v589_v18 = vadd.f32 %v557_v17, %v456_v46 }
  0xd1   : > { %v760_v44 = vmul.f32 %v2674_v34, %v2928_v45  ;;  %v1486_v51 = vsel %vm269_vm0, %v1430_v32, 0.0  ;;  %v1196_v61 = vadd.f32 %v1164_v52, %v1095_v14  ;;  %v892_v16 = vadd.f32 %v860_v11, %v791_v35  ;;  %v1028_v11 = vld [vmem:[#allocation2 + $0x198] sm:$0xff] }
  0xd2   : > { %v1064_v26 = vmul.f32 %v2682_v0, %v1026_v9  ;;  %v1385_v59 = vsel %vm269_vm0, %v1296_v8, 0.0  ;;  %v1165_v47 = vmul.f32 %v2692_v42, %v1128_v15  ;;  %v690_v55 = vadd.f32 %v658_v62, %v589_v18 }
  0xd3   : > { %v861_v30 = vmul.f32 %v2699_v48, %v2932_v1  ;;  %v1431_v63 = vmul.f32 %v1296_v8, %v1296_v8  ;;  %v1297_v28 = vadd.f32 %v1265_v60, %v1196_v61  ;;  %v993_v37 = vadd.f32 %v961_v25, %v892_v16  ;;  %v1130_v25 = vld [vmem:[#allocation2 + $0x199] sm:$0xff] }
  0xd4   : > { %v457_v41 = vmul.f32 %v2646_v19, %v2904_v4  ;;  %v792_v10 = vadd.f32 %v760_v44, %v690_v55  ;;  %v962_v36 = vmul.f32 %v2708_v20, %v2934_v57  ;;  %v558_v43 = vmul.f32 %v2653_v29, %v2911_v3 }
  0xd5   : > { %v659_v50 = vmul.f32 %v2660_v23, %v1227_v33  ;;  %v1487_v21 = vadd.f32 %v1486_v51, %v1485_v38  ;;  %v1386_v53 = vadd.f32 %v1385_v59, %v1384_v27  ;;  %1329 = vst.msk [vmem:[%s2216_s21 + $0xd8] sm:$0xff] %vm269_vm0, %v1297_v28  ;;  %v1096_v54 = vadd.f32 %v1064_v26, %v993_v37  ;;  %v1029_v59 = vld [vmem:[#allocation2 + $0x1a0] sm:$0xff] }
  0xd6   : > { %v1266_v2 = vmul.f32 %v2735_v12, %v1229_v31  ;;  %v893_v58 = vadd.f32 %v861_v30, %v792_v10  ;;  %v1065_v4 = vmul.f32 %v2682_v0, %v1027_v5  ;;  %v590_v7 = vadd.f32 %v558_v43, %v457_v41 }
  0xd7   : > { %v761_v22 = vmul.f32 %v2674_v34, %v1026_v9  ;;  %v1488_v6 = vsel %vm269_vm0, %v1431_v63, 0.0  ;;  %v1197_v56 = vadd.f32 %v1165_v47, %v1096_v54  ;;  %v1166_v3 = vmul.f32 %v2692_v42, %v1129_v24 }
  0xd8   : > { %v1267_v33 = vmul.f32 %v2735_v12, %v1230_v40  ;;  %v1432_v52 = vmul.f32 %v1297_v28, %v1297_v28  ;;  %v994_v60 = vadd.f32 %v962_v36, %v893_v58  ;;  %v691_v32 = vadd.f32 %v659_v50, %v590_v7 }
  0xd9   : > { %v862_v49 = vmul.f32 %v2699_v48, %v1128_v15  ;;  %v1298_v39 = vadd.f32 %v1266_v2, %v1197_v56  ;;  %v458_v8 = vmul.f32 %v2646_v19, %v2928_v45  ;;  %v559_v9 = vmul.f32 %v2653_v29, %v2932_v1 }
  0xda   : > { %v660_v46 = vmul.f32 %v2660_v23, %v2934_v57  ;;  %v1489_v17 = vadd.f32 %v1488_v6, %v1487_v21  ;;  %v1097_v62 = vadd.f32 %v1065_v4, %v994_v60  ;;  %v793_v13 = vadd.f32 %v761_v22, %v691_v32  ;;  %v1231_v57 = vld [vmem:[#allocation2 + $0x19a] sm:$0xff] }
  0xdb   : > { %v963_v14 = vmul.f32 %v2708_v20, %v1229_v31  ;;  %v1387_v35 = vsel %vm269_vm0, %v1297_v28, 0.0  ;;  %1330 = vst.msk [vmem:[%s2216_s21 + $0xe0] sm:$0xff] %vm269_vm0, %v1298_v39  ;;  %v591_v15 = vadd.f32 %v559_v9, %v458_v8  ;;  %v762_v38 = vmul.f32 %v2674_v34, %v1027_v5  ;;  %v1131_v28 = vld [vmem:[#allocation2 + $0x1a1] sm:$0xff] }
  0xdc   : > { %v1388_v19 = vadd.f32 %v1387_v35, %v1386_v53  ;;  %v1198_v45 = vadd.f32 %v1166_v3, %v1097_v62  ;;  %v894_v27 = vadd.f32 %v862_v49, %v793_v13  ;;  %v1066_v29 = vmul.f32 %v2682_v0, %v1028_v11 }
  0xdd   : > { %v1490_v23 = vsel %vm269_vm0, %v1432_v52, 0.0  ;;  %v1433_v1 = vmul.f32 %v1298_v39, %v1298_v39  ;;  %v692_v18 = vadd.f32 %v660_v46, %v591_v15  ;;  %v863_v44 = vmul.f32 %v2699_v48, %v1129_v24  ;;  %v1232_v24 = vld [vmem:[#allocation2 + $0x1a2] sm:$0xff] }
  0xde   : > { %v1491_v51 = vadd.f32 %v1490_v23, %v1489_v17  ;;  %v1299_v61 = vadd.f32 %v1267_v33, %v1198_v45  ;;  %v995_v16 = vadd.f32 %v963_v14, %v894_v27  ;;  %v1167_v26 = vmul.f32 %v2692_v42, %v1130_v25 }
  0xdf   : > { %v1389_v34 = vsel %vm269_vm0, %v1298_v39, 0.0  ;;  %v794_v47 = vadd.f32 %v762_v38, %v692_v18  ;;  %v964_v31 = vmul.f32 %v2708_v20, %v1230_v40  ;;  %v1268_v63 = vmul.f32 %v2735_v12, %v1231_v57 }
  0xe0   : > { %v1390_v55 = vadd.f32 %v1389_v34, %v1388_v19  ;;  %1331 = vst.msk [vmem:[%s2216_s21 + $0xe8] sm:$0xff] %vm269_vm0, %v1299_v61  ;;  %v1098_v30 = vadd.f32 %v1066_v29, %v995_v16  ;;  %v1492_v48 = vsel %vm269_vm0, %v1433_v1, 0.0  ;;  %v1434_v37 = vmul.f32 %v1299_v61, %v1299_v61 }
  0xe1   : > { %v895_v5 = vadd.f32 %v863_v44, %v794_v47  ;;  %v1067_v41 = vmul.f32 %v2682_v0, %v1029_v59  ;;  %v1493_v10 = vadd.f32 %v1492_v48, %v1491_v51  ;;  %v1391_v43 = vsel %vm269_vm0, %v1299_v61, 0.0 }
  0xe2   : > { %v1199_v36 = vadd.f32 %v1167_v26, %v1098_v30  ;;  %v1168_v40 = vmul.f32 %v2692_v42, %v1131_v28  ;;  %v1392_v50 = vadd.f32 %v1391_v43, %v1390_v55  ;;  %v1494_v53 = vsel %vm269_vm0, %v1434_v37, 0.0 }
  0xe3   : > { %v996_v20 = vadd.f32 %v964_v31, %v895_v5  ;;  %v1269_v2 = vmul.f32 %v2735_v12, %v1232_v24  ;;  %v1495_v58 = vadd.f32 %v1494_v53, %v1493_v10 }
  0xe4   : > { %v1300_v21 = vadd.f32 %v1268_v63, %v1199_v36 }
  0xe5   : > { %v1099_v54 = vadd.f32 %v1067_v41, %v996_v20 }
  0xe6   : > { %1332 = vst.msk [vmem:[%s2216_s21 + $0xf0] sm:$0xff] %vm269_vm0, %v1300_v21  ;;  %v1435_v0 = vmul.f32 %v1300_v21, %v1300_v21  ;;  %v1393_v4 = vsel %vm269_vm0, %v1300_v21, 0.0 }
  0xe7   : > { %v1200_v7 = vadd.f32 %v1168_v40, %v1099_v54  ;;  %v1394_v22 = vadd.f32 %v1393_v4, %v1392_v50 }
  0xe8   : > { %v1496_v6 = vsel %vm269_vm0, %v1435_v0, 0.0 }
  0xe9   : > { %v1301_v56 = vadd.f32 %v1269_v2, %v1200_v7  ;;  %v1497_v42 = vadd.f32 %v1496_v6, %v1495_v58 }
  0xeb   : > { %1333 = vst.msk [vmem:[%s2216_s21 + $0xf8] sm:$0xff] %vm269_vm0, %v1301_v56  ;;  %v1395_v3 = vsel %vm269_vm0, %v1301_v56, 0.0  ;;  %v1436_v33 = vmul.f32 %v1301_v56, %v1301_v56  ;;  %s242_s21 = scalar_lea.vmem [#allocation3], %s3014_s22 }
  0xec   : > { %v1396_v52 = vadd.f32 %v1395_v3, %v1394_v22  ;;  %s1536_s24 = sshll.u32 %s242_s21, 4  ;;  %s3021_s24 = int_to_ptr.vmem [resolvable:$true] %s1536_s24 }
  0xed   : > { %v1498_v12 = vsel %vm269_vm0, %v1436_v33, 0.0  ;;  %s1801_s14 = scalar_lea.vmem %s3021_s24, 16  ;;  %p1808_p1 = scmp.lt.s32.totalorder %s3021_s24, %s1806_s30 }
  0xee   : > { %v1397_v60 = vrot.slane %v1396_v52, 4  ;;  %v1499_v32 = vadd.f32 %v1498_v12, %v1497_v42  ;;  %p1802_p12 = scmp.ne.s32.totalorder %s3021_s24, %s1801_s14  ;;  %p1809_p2 = scmp.lt.s32.totalorder %s1807_s7, %s1801_s14 }
  0xf0   : > { %v1398_v49 = vadd.f32 %v1397_v60, %v1396_v52  ;;  %v1500_v39 = vrot.slane %v1499_v32, 4  ;;  %p1803_p13 = pnand %p1802_p12, %p1977_p4  ;;  %p1810_p3 = por %p1809_p2, %p1808_p1 }
  0xf2   : > { %v1399_v11 = vrot.slane %v1398_v49, 2  ;;  %v1501_v8 = vadd.f32 %v1500_v39, %v1499_v32  ;;  %p1804_p0 = pneg %p1803_p13 }
  0xf4   : > { %v1400_v9 = vadd.f32 %v1399_v11, %v1398_v49  ;;  %v1502_v46 = vrot.slane %v1501_v8, 2  ;;  %p1811_p5 = pnand %p1810_p3, %p1804_p0 }
  0xf6   : > { %v1401_v17 = vrot.slane %v1400_v9, 1  ;;  %v1503_v62 = vadd.f32 %v1502_v46, %v1501_v8 }
  0xf8   : > { %v1402_v13 = vadd.f32 %v1401_v17, %v1400_v9  ;;  %v1504_v14 = vrot.slane %v1503_v62, 1 }
  0xfa   : > { %1404 = vst.msk [vmem:[%s242_s21] sm:$0x1] %vm1403_vm2, %v1402_v13  ;;  %v1505_v35 = vadd.f32 %v1504_v14, %v1503_v62 }
  0xfb   : > { %1814 = shalt.err (!%p1811_p5)
}
  0xfc   : > { %s1815_s21 = scalar_lea.hbm %s3026_s10, 16  ;;  %s1819_s9 = scalar_lea.hbm %s3106_s3, 32 }
  0xfd   : > { %p1816_p6 = scmp.ne.s32.totalorder %s3026_s10, %s1815_s21  ;;  %p1820_p10 = scmp.lt.s32.totalorder %s3026_s10, %s3106_s3 }
  0xfe   : > { %p1821_p11 = scmp.lt.s32.totalorder %s1819_s9, %s1815_s21 }
  0xff   : > { %p1817_p7 = pnand %p1816_p6, %p1977_p4 }
 0x100   : > { %p1822_p12 = por %p1821_p11, %p1820_p10 }
 0x101   : > { %p1818_p9 = pneg %p1817_p7 }
 0x103   : > { %p1823_p13 = pnand %p1822_p12, %p1818_p9 }
 0x105   : > { %1826 = shalt.err (!%p1823_p13)
}
 0x106   : > { %1731 = dma.vmem_to_hbm [thread:$0]  (%p1977_p4), %s3021_s24, 16, %s3026_s10, %s1516_s13   ;;  %1506 = vst.msk [vmem:[%s248_s5] sm:$0x1] %vm1403_vm2, %v1505_v35 }
 0x107   : > { %s1520_s14 = scalar_lea.sflag [#allocation6], %s3014_s22  ;;  %s1827_s29 = scalar_lea.vmem %s3028_s6, 16 }
 0x108   : > { %p1828_p0 = scmp.ne.s32.totalorder %s3028_s6, %s1827_s29  ;;  %s1911_s30 = smov [#allocation5]  }
 0x109   : > { %s1831_s7 = sshll.u32 %s1911_s30, 4  ;;  %s1832_s7 = int_to_ptr.vmem [resolvable:$false] %s1831_s7 }
 0x10a   : > { %p1829_p1 = pnand %p1828_p0, %p1977_p4  ;;  %s1833_s21 = scalar_lea.vmem %s1832_s7, 32 }
 0x10b   : > { %p1834_p3 = scmp.lt.s32.totalorder %s3028_s6, %s1832_s7  ;;  %p1835_p5 = scmp.lt.s32.totalorder %s1833_s21, %s1827_s29 }
 0x10c   : > { %p1830_p2 = pneg %p1829_p1 }
 0x10d   : > { %p1836_p6 = por %p1835_p5, %p1834_p3 }
 0x10f   : > { %p1837_p7 = pnand %p1836_p6, %p1830_p2 }
 0x111   : > { %1840 = shalt.err (!%p1837_p7)
}
 0x112   : > { %s1841_s24 = scalar_lea.hbm %s3034_s12, 16  ;;  %s1845_s10 = scalar_lea.hbm %s3107_s4, 32 }
 0x113   : > { %p1842_p9 = scmp.ne.s32.totalorder %s3034_s12, %s1841_s24  ;;  %p1846_p12 = scmp.lt.s32.totalorder %s3034_s12, %s3107_s4 }
 0x114   : > { %p1847_p13 = scmp.lt.s32.totalorder %s1845_s10, %s1841_s24 }
 0x115   : > { %p1843_p10 = pnand %p1842_p9, %p1977_p4 }
 0x116   : > { %p1848_p0 = por %p1847_p13, %p1846_p12 }
 0x117   : > { %p1844_p11 = pneg %p1843_p10 }
 0x119   : > { %p1849_p1 = pnand %p1848_p0, %p1844_p11 }
 0x11b   : > { %1852 = shalt.err (!%p1849_p1)
}
 0x11c   : > { %1732 = dma.vmem_to_hbm [thread:$0]  (%p1977_p4), %s3028_s6, 16, %s3034_s12, %s1520_s14  }
 0x11d PF: > { %p1742_p2 = scmp.ge.s32.totalorder %s1907_s20, 2  ;;  %s1573_s8 = sand.u32 1, %s1887_s15  }
 0x11e   : > { %s1574_s9 = scalar_lea.sflag [#allocation4], %s1573_s8 }
 0x11f   : > { %p1736_p3 = pnand %p1742_p2, %p1984_p8 }
 0x121   : > { %p1737_p5 = pneg %p1736_p3 }
 0x123   : > { %1878 = dma.done.wait (%p1737_p5), %s1574_s9, 16  }
 0x124   : > { %1880 = vsyncadd (%p1737_p5), %s1574_s9, 4294967280  ;;  %s1582_s18 = scalar_lea.sflag [#allocation6], %s1573_s8 }
 0x125   : > { %1882 = dma.done.wait (%p1737_p5), %s1582_s18, 16  }
 0x126   : > { %1884 = vsyncadd (%p1737_p5), %s1582_s18, 4294967280  ;;  %s21_s20 = sadd.s32 1, %s1907_s20   ;;  %s3110_s15 = smov %s1891_s16 }
 0x127   : > { %p18_p6 = scmp.ge.s32.totalorder %s21_s20, 4   ;;  %s3111_s16 = smov %s1895_s17 }
 0x128   : > { %s3112_s17 = smov %s1990_s28  ;;  %s3113_s18 = smov %s1903_s19 }
 0x129   : > { %s3114_s19 = smov %s3116_s23  ;;  %20 = sbr.rel (!%p18_p6) target bundleno = 6 (0x6), region = 99 }
 0x12e   :  { %1586 = vsyncpa [#allocation4], 1 }
 0x12f   :  { %1588 = vsyncpa [#allocation4 + $0x1], 1 }
 0x130   :  { %1589 = vsyncpa [#allocation6], 1 }
 0x131   :  { %1591 = vsyncpa [#allocation6 + $0x1], 1 }

</bundles_post_ra>
